<compile_context>
chip_gen: v5e
topology: v5e:2x2
jax: 0.10.0
libtpu: 0.0.40
codegen_flags: <defaults>
</compile_context>

<pallas_src>
import jax
import jax.numpy as jnp
import numpy as np
from jax import lax
from jax.experimental import pallas as pl
from jax.experimental.pallas import tpu as pltpu

_SUBLANE = 8        # f32 sublane count -> pad batch to a multiple of this
_LANE = 128         # lane count        -> pad D and Hh to multiples of this

_X_BLOCK_TARGET_BYTES = 2 * 2**20      # ~2 MiB x block per grid step
_FUSED_W1_BYTES_MAX = 8 * 2**20        # keep W1 VMEM-resident up to this size
_DEFAULT_D_TILE = 512                  # D tile for the streamed large-D path


def _round_up(n, m):
    return ((n + m - 1) // m) * m


def _vmem_limit(est_bytes):
    """Scoped-VMEM limit derived from block sizes (generous headroom)."""
    return int(min(64 * 2**20, max(32 * 2**20, 2 * est_bytes + 4 * 2**20)))


# ----------------------------------------------------------------------------
# Kernels
# ----------------------------------------------------------------------------
def _vfield_fused_kernel(x_ref, w1_ref, beff_ref, w2_ref, out_ref):
    """All evals of one grid step as a single [M, Dp] x W1 matmul pair.

    x_ref   : VMEM [M, Dp]       M = te*Bp flattened (eval, batch) rows
    w1_ref  : VMEM [Hp, Dp]      resident W1 (single copy, single buffer)
    beff_ref: VMEM [te, 1, Hp]   b1 + t*wt, one row per eval in this block
    w2_ref  : VMEM [1, Hp]       second-layer weight
    out_ref : VMEM [M, Dp]       vector field d(sum phi)/dx
    """
    m, _ = x_ref.shape
    te, _, hp = beff_ref.shape
    w1 = w1_ref[...]

    # z = x @ W1^T : contract the minor (lane) dim of both operands (native
    # MXU orientation, no transpose copy of W1 needed).
    z = lax.dot_general(x_ref[...], w1,
                        dimension_numbers=(((1,), (1,)), ((), ())),
                        preferred_element_type=jnp.float32)          # [M, Hp]
    # Per-eval time/bias term (free reshape: Bp==8 sublanes, Hp lane-aligned).
    z = z.reshape(te, m // te, hp) + beff_ref[...]
    s = jnp.tanh(z)                                                  # EUP
    sech2 = (1.0 - s * s).reshape(m, hp)
    g = sech2 * w2_ref[...]                                          # VPU
    # vfield = g @ W1 : standard [M,K] x [K,N] orientation, same resident W1.
    out_ref[...] = jnp.dot(g.astype(w1.dtype), w1,
                           preferred_element_type=jnp.float32)


def _streamed_g_kernel(x_ref, w1_ref, beff_ref, w2_ref, g_ref, z_acc):
    """Phase 1 (large D): accumulate z over D tiles, emit g on the last tile."""
    @pl.when(pl.program_id(1) == 0)
    def _():
        z_acc[...] = jnp.zeros_like(z_acc)

    z_acc[...] += lax.dot_general(x_ref[...], w1_ref[...],
                                  dimension_numbers=(((1,), (1,)), ((), ())),
                                  preferred_element_type=jnp.float32)

    @pl.when(pl.program_id(1) == pl.num_programs(1) - 1)
    def _():
        m, hp = z_acc.shape
        te = beff_ref.shape[0]
        z = z_acc[...].reshape(te, m // te, hp) + beff_ref[...]
        s = jnp.tanh(z)
        sech2 = (1.0 - s * s).reshape(m, hp)
        g_ref[...] = sech2 * w2_ref[...]


def _streamed_out_kernel(g_ref, w1_ref, out_ref):
    """Phase 2 (large D): stream the same D tiles again, out_tile = g @ W1_tile."""
    out_ref[...] = jnp.dot(g_ref[...].astype(w1_ref.dtype), w1_ref[...],
                           preferred_element_type=jnp.float32)


# ----------------------------------------------------------------------------
# pallas_call wrappers
# ----------------------------------------------------------------------------
def _fused_call(x2, w1p, beff, w2p, *, te, Bp, Dp, Hp):
    Mp = x2.shape[0]
    n_blocks = Mp // (te * Bp)

    cost = pl.CostEstimate(
        flops=4 * Mp * Dp * Hp,                 # two M x Dp x Hp matmuls
        transcendentals=Mp * Hp,                # tanh
        bytes_accessed=4 * (2 * Mp * Dp + Hp * Dp + int(beff.size) + Hp))

    est = 4 * (4 * te * Bp * Dp                 # x + out blocks, double-buffered
               + Hp * Dp + Hp                   # resident W1 + w2
               + 4 * te * Hp                    # b_eff blocks
               + 6 * te * Bp * Hp)              # z / g intermediates
    cparams = pltpu.CompilerParams(
        dimension_semantics=("arbitrary",),     # no megacore split: W1-HBM-bound
        vmem_limit_bytes=_vmem_limit(est))

    def run(single_buffer_weights):
        wkw = (dict(pipeline_mode=pl.Buffered(1))
               if single_buffer_weights else {})
        return pl.pallas_call(
            _vfield_fused_kernel,
            out_shape=jax.ShapeDtypeStruct((Mp, Dp), jnp.float32),
            grid_spec=pltpu.PrefetchScalarGridSpec(
                num_scalar_prefetch=0,
                grid=(n_blocks,),
                in_specs=[
                    pl.BlockSpec((te * Bp, Dp), lambda e: (e, 0)),       # x
                    pl.BlockSpec((Hp, Dp), lambda e: (0, 0), **wkw),     # W1
                    pl.BlockSpec((te, 1, Hp), lambda e: (e, 0, 0)),      # b_eff
                    pl.BlockSpec((1, Hp), lambda e: (0, 0), **wkw),      # w2
                ],
                out_specs=pl.BlockSpec((te * Bp, Dp), lambda e: (e, 0)),
            ),
            compiler_params=cparams,
            cost_estimate=cost,
        )(x2, w1p, beff, w2p)

    try:
        return run(True)    # resident weights single-buffered (constant index)
    except Exception:       # pipeline_mode unsupported on this build: default
        return run(False)


def _streamed_call(x2, w1p, beff, w2p, *, te, Bp, Dp, Hp, tk):
    """Two-phase streamed path for large D: W1 never fully resident in VMEM."""
    Mp = x2.shape[0]
    mb = te * Bp
    n_blocks = Mp // mb
    kd = Dp // tk

    est1 = 4 * (2 * mb * tk + 2 * Hp * tk + 4 * te * Hp + 2 * Hp
                + 2 * mb * Hp + 5 * mb * Hp)
    g = pl.pallas_call(
        _streamed_g_kernel,
        out_shape=jax.ShapeDtypeStruct((Mp, Hp), jnp.float32),
        grid_spec=pltpu.PrefetchScalarGridSpec(
            num_scalar_prefetch=0,
            grid=(n_blocks, kd),                      # reduction (D) axis last
            in_specs=[
                pl.BlockSpec((mb, tk), lambda e, k: (e, k)),       # x tile
                pl.BlockSpec((Hp, tk), lambda e, k: (0, k)),       # W1 tile
                pl.BlockSpec((te, 1, Hp), lambda e, k: (e, 0, 0)),  # b_eff
                pl.BlockSpec((1, Hp), lambda e, k: (0, 0)),        # w2
            ],
            out_specs=pl.BlockSpec((mb, Hp), lambda e, k: (e, 0)),
            scratch_shapes=[pltpu.VMEM((mb, Hp), jnp.float32)],    # z accumulator
        ),
        compiler_params=pltpu.CompilerParams(
            dimension_semantics=("arbitrary", "arbitrary"),
            vmem_limit_bytes=_vmem_limit(est1)),
    )(x2, w1p, beff, w2p)

    est2 = 4 * (2 * mb * Hp + 2 * Hp * tk + 4 * mb * tk)
    out = pl.pallas_call(
        _streamed_out_kernel,
        out_shape=jax.ShapeDtypeStruct((Mp, Dp), jnp.float32),
        grid_spec=pltpu.PrefetchScalarGridSpec(
            num_scalar_prefetch=0,
            grid=(n_blocks, kd),
            in_specs=[
                pl.BlockSpec((mb, Hp), lambda e, k: (e, 0)),       # g (reused)
                pl.BlockSpec((Hp, tk), lambda e, k: (0, k)),       # W1 tile
            ],
            out_specs=pl.BlockSpec((mb, tk), lambda e, k: (e, k)),
        ),
        compiler_params=pltpu.CompilerParams(
            dimension_semantics=("arbitrary", "arbitrary"),
            vmem_limit_bytes=_vmem_limit(est2)),
    )(g, w1p)
    return out


# ----------------------------------------------------------------------------
# Public API
# ----------------------------------------------------------------------------
def prepare_params(params, compute_dtype=jnp.float32):
    """One-time weight prep (pad + cast); hoist this out of the ODE loop."""
    w1, b1, wt, w2, _b2 = params
    Hh, D = w1.shape
    Dp = _round_up(D, _LANE)
    Hp = _round_up(Hh, _LANE)      # lane-dense Hh-minor tensors; zero padding
    w1p = jnp.pad(jnp.asarray(w1, compute_dtype), ((0, Hp - Hh), (0, Dp - D)))
    b1p = jnp.pad(jnp.asarray(b1, jnp.float32).reshape(1, Hh),
                  ((0, 0), (0, Hp - Hh)))
    wtp = jnp.pad(jnp.asarray(wt, jnp.float32).reshape(1, Hh),
                  ((0, 0), (0, Hp - Hh)))
    w2p = jnp.pad(jnp.asarray(w2, jnp.float32).reshape(1, Hh),
                  ((0, 0), (0, Hp - Hh)))
    return dict(w1p=w1p, b1p=b1p, wtp=wtp, w2p=w2p,
                D=D, Hh=Hh, Dp=Dp, Hp=Hp, compute_dtype=compute_dtype)


def su3_vfield_batched(ts, xs, params=None, *, prepared=None, d_tile=None):
    """Batched evaluations.  ts: [E], xs: [E, B, *spatial] -> same shape as xs."""
    if prepared is None:
        prepared = prepare_params(params)
    D, Dp0, Hp = prepared["D"], prepared["Dp"], prepared["Hp"]
    cdt = prepared["compute_dtype"]
    w1p, w2p = prepared["w1p"], prepared["w2p"]

    E, B = xs.shape[0], xs.shape[1]
    assert int(np.prod(xs.shape[2:])) == D
    Bp = _round_up(max(B, _SUBLANE), _SUBLANE)

    # Path selection: keep W1 resident when it comfortably fits VMEM, otherwise
    # stream D tiles (mandatory for realistic lattice D, esp. v7x 64 MiB VMEM).
    w1_bytes = Hp * Dp0 * np.dtype(cdt).itemsize
    if d_tile is None and w1_bytes <= _FUSED_W1_BYTES_MAX:
        fused, tk, Dp = True, None, Dp0
    else:
        fused = False
        tk = _round_up(min(int(d_tile or _DEFAULT_D_TILE), Dp0), _LANE)
        Dp = _round_up(Dp0, tk)
        if Dp > w1p.shape[1]:   # only when tk does not divide the padded D
            w1p = jnp.pad(w1p, ((0, 0), (0, Dp - w1p.shape[1])))

    # Evals-per-grid-step: collapse (eval, batch) into the matmul M dimension.
    row_bytes = Bp * (Dp if fused else tk) * 4
    te = max(1, min(E, _X_BLOCK_TARGET_BYTES // max(1, row_bytes)))
    Ep = _round_up(E, te)

    # Layout plumbing.  Zero padding never contaminates the sliced-off outputs:
    # padded W1 rows/cols, b1/wt/w2 entries, batch rows and eval rows all
    # contribute exactly zero to the real rows/columns.
    x3 = jnp.pad(jnp.asarray(xs, cdt).reshape(E, B, D),
                 ((0, Ep - E), (0, Bp - B), (0, Dp - D)))
    x2 = x3.reshape(Ep * Bp, Dp)

    ts = jnp.asarray(ts, jnp.float32).reshape(E)
    beff = prepared["b1p"] + ts[:, None] * prepared["wtp"]            # [E, Hp]
    beff = jnp.pad(beff, ((0, Ep - E), (0, 0)))[:, None, :]           # [Ep,1,Hp]

    if fused:
        out2 = _fused_call(x2, w1p, beff, w2p, te=te, Bp=Bp, Dp=Dp, Hp=Hp)
    else:
        out2 = _streamed_call(x2, w1p, beff, w2p,
                              te=te, Bp=Bp, Dp=Dp, Hp=Hp, tk=tk)

    out = out2.reshape(Ep, Bp, Dp)[:E, :B, :D]
    return out.reshape(xs.shape).astype(xs.dtype)


def su3_time_equivariant_vector_field(t, x_nchw, params=None, *, prepared=None):
    """JAX equivalent of the PyTorch module's forward(t, x)."""
    ts = jnp.asarray(t, jnp.float32).reshape((1,))
    return su3_vfield_batched(ts, x_nchw[None], params, prepared=prepared)[0]


def _phi_ref(t, x_nchw, params):
    """Pure-JAX reference of the wrapped potential func(t, x), summed."""
    w1, b1, wt, w2, b2 = params
    B = x_nchw.shape[0]
    x_flat = x_nchw.reshape(B, -1)
    z = x_flat @ w1.T + t * wt + b1
    out = jnp.tanh(z) @ w2.reshape(-1) + b2        # [B] potential per batch row
    return out.squeeze().sum()


if __name__ == "__main__":
    # Small shapes: batch=2, channels=4, spatial=16x16, hidden=32.
    B, C, H, W = 2, 4, 16, 16
    Hh = 32
    D = C * H * W

    key = jax.random.PRNGKey(0)
    k_x, k_w1, k_b1, k_wt, k_w2, k_b2, k_xs = jax.random.split(key, 7)

    x = jax.random.normal(k_x, (B, C, H, W), dtype=jnp.float32)
    t = jnp.float32(0.3)

    w1 = jax.random.normal(k_w1, (Hh, D), dtype=jnp.float32) * (1.0 / np.sqrt(D))
    b1 = jax.random.normal(k_b1, (1, Hh), dtype=jnp.float32) * 0.1
    wt = jax.random.normal(k_wt, (1, Hh), dtype=jnp.float32) * 0.1
    w2 = jax.random.normal(k_w2, (1, Hh), dtype=jnp.float32) * (1.0 / np.sqrt(Hh))
    b2 = jax.random.normal(k_b2, (), dtype=jnp.float32)
    params = (w1, b1, wt, w2, b2)

    prepared = prepare_params(params)          # hoisted one-time weight prep

    # --- single evaluation (matches torch forward(t, x)) ---------------------
    vfield = su3_time_equivariant_vector_field(t, x, prepared=prepared)
    vfield = jax.block_until_ready(vfield)
    vfield_ref = jax.grad(lambda xx: _phi_ref(t, xx, params))(x)
    np.testing.assert_allclose(np.asarray(vfield), np.asarray(vfield_ref),
                               rtol=1e-4, atol=1e-5)

    # --- batched evaluations (E collapsed into the matmul M dimension) -------
    E = 3
    ts = jnp.array([0.0, 0.3, 0.7], dtype=jnp.float32)
    xs = jax.random.normal(k_xs, (E, B, C, H, W), dtype=jnp.float32)
    vfields = jax.block_until_ready(
        su3_vfield_batched(ts, xs, prepared=prepared))
    for e in range(E):
        ref_e = jax.grad(lambda xx: _phi_ref(ts[e], xx, params))(xs[e])
        np.testing.assert_allclose(np.asarray(vfields[e]), np.asarray(ref_e),
                                   rtol=1e-4, atol=1e-5)

    # --- streamed two-phase D-tiled path (large-D / v7x structure), forced ---
    vfields_s = jax.block_until_ready(
        su3_vfield_batched(ts, xs, prepared=prepared, d_tile=256))
    np.testing.assert_allclose(np.asarray(vfields_s), np.asarray(vfields),
                               rtol=1e-4, atol=1e-5)

    # TODO(synk): optional bf16 weight/activation path
    # (prepare_params(compute_dtype=jnp.bfloat16)) is available but unvalidated
    # against the 1e-4 rtol for large-D contractions, so it is not exercised.

    print("KERNEL_OK")
</pallas_src>

<mosaic_0001>
module attributes {stable_mosaic.version = 11 : i64} {
  func.func @_vfield_fused_kernel(%arg0: i32, %arg1: memref<8x1024xf32, #tpu.memory_space<vmem>>, %arg2: memref<128x1024xf32, #tpu.memory_space<vmem>>, %arg3: memref<1x1x128xf32, #tpu.memory_space<vmem>>, %arg4: memref<1x128xf32, #tpu.memory_space<vmem>>, %arg5: memref<8x1024xf32, #tpu.memory_space<vmem>>) attributes {dimension_semantics = [#tpu.dimension_semantics<arbitrary>], iteration_bounds = array<i64: 1>, scalar_prefetch = 0 : i64, scratch_operands = 0 : i64, tpu.core_type = #tpu.core_type<tc>, window_params = [{transform_indices = @transform_0, window_bounds = array<i64: 8, 1024>}, {pipeline_mode = #tpu.pipeline_mode<synchronous>, transform_indices = @transform_1, window_bounds = array<i64: 128, 1024>}, {transform_indices = @transform_2, window_bounds = array<i64: 1, 1, 128>}, {pipeline_mode = #tpu.pipeline_mode<synchronous>, transform_indices = @transform_3, window_bounds = array<i64: 1, 128>}, {transform_indices = @transform_4, window_bounds = array<i64: 8, 1024>}]} {
    %c0 = arith.constant 0 : index
    %c0_0 = arith.constant 0 : index
    %0 = vector.load %arg2[%c0, %c0_0] : memref<128x1024xf32, #tpu.memory_space<vmem>>, vector<128x1024xf32>
    %c0_1 = arith.constant 0 : index
    %c0_2 = arith.constant 0 : index
    %1 = vector.load %arg1[%c0_1, %c0_2] : memref<8x1024xf32, #tpu.memory_space<vmem>>, vector<8x1024xf32>
    %cst = arith.constant dense<0.000000e+00> : vector<8x128xf32>
    %2 = tpu.matmul %1, %0, %cst {dimension_numbers = #tpu.dot_dimension_numbers<[1], [1], [0], [0], [0, 0, 1, 0], [], []>} : vector<8x1024xf32>, vector<128x1024xf32>, vector<8x128xf32> -> vector<8x128xf32>
    %3 = vector.shape_cast %2 : vector<8x128xf32> to vector<1x8x128xf32>
    %c0_3 = arith.constant 0 : index
    %c0_4 = arith.constant 0 : index
    %c0_5 = arith.constant 0 : index
    %4 = vector.load %arg3[%c0_3, %c0_4, %c0_5] : memref<1x1x128xf32, #tpu.memory_space<vmem>>, vector<1x1x128xf32>
    %5 = vector.broadcast %4 : vector<1x1x128xf32> to vector<1x8x128xf32>
    %6 = arith.addf %3, %5 : vector<1x8x128xf32>
    %7 = math.tanh %6 : vector<1x8x128xf32>
    %8 = arith.mulf %7, %7 : vector<1x8x128xf32>
    %cst_6 = arith.constant 1.000000e+00 : f32
    %9 = vector.broadcast %cst_6 : f32 to vector<1x8x128xf32>
    %10 = arith.subf %9, %8 : vector<1x8x128xf32>
    %11 = vector.shape_cast %10 : vector<1x8x128xf32> to vector<8x128xf32>
    %c0_7 = arith.constant 0 : index
    %c0_8 = arith.constant 0 : index
    %12 = vector.load %arg4[%c0_7, %c0_8] : memref<1x128xf32, #tpu.memory_space<vmem>>, vector<1x128xf32>
    %13 = vector.broadcast %12 : vector<1x128xf32> to vector<8x128xf32>
    %14 = arith.mulf %11, %13 : vector<8x128xf32>
    %cst_9 = arith.constant dense<0.000000e+00> : vector<8x1024xf32>
    %15 = tpu.matmul %14, %0, %cst_9 {dimension_numbers = #tpu.dot_dimension_numbers<[1], [0], [0], [1], [0, 0, 1, 1], [], []>} : vector<8x128xf32>, vector<128x1024xf32>, vector<8x1024xf32> -> vector<8x1024xf32>
    %c0_10 = arith.constant 0 : index
    %c0_11 = arith.constant 0 : index
    %16 = vector.load %arg5[%c0_10, %c0_11] : memref<8x1024xf32, #tpu.memory_space<vmem>>, vector<8x1024xf32>
    tpu.vector_store %arg5[%c0_10, %c0_11], %15 {strides = array<i32>} : memref<8x1024xf32, #tpu.memory_space<vmem>>, vector<8x1024xf32>,
    return
  }
  func.func @transform_0(%arg0: i32) -> (i32, i32) {
    %c0_i32 = arith.constant 0 : i32
    %c0_i32_0 = arith.constant 0 : i32
    return %arg0, %c0_i32 : i32, i32
  }
  func.func @transform_1(%arg0: i32) -> (i32, i32) {
    %c0_i32 = arith.constant 0 : i32
    %c0_i32_0 = arith.constant 0 : i32
    %c0_i32_1 = arith.constant 0 : i32
    return %c0_i32, %c0_i32_0 : i32, i32
  }
  func.func @transform_2(%arg0: i32) -> (i32, i32, i32) {
    %c0_i32 = arith.constant 0 : i32
    %c0_i32_0 = arith.constant 0 : i32
    %c0_i32_1 = arith.constant 0 : i32
    return %arg0, %c0_i32, %c0_i32_0 : i32, i32, i32
  }
  func.func @transform_3(%arg0: i32) -> (i32, i32) {
    %c0_i32 = arith.constant 0 : i32
    %c0_i32_0 = arith.constant 0 : i32
    %c0_i32_1 = arith.constant 0 : i32
    return %c0_i32, %c0_i32_0 : i32, i32
  }
  func.func @transform_4(%arg0: i32) -> (i32, i32) {
    %c0_i32 = arith.constant 0 : i32
    %c0_i32_0 = arith.constant 0 : i32
    return %arg0, %c0_i32 : i32, i32
  }
}

module attributes {stable_mosaic.version = 11 : i64} {
  func.func @_vfield_fused_kernel(%arg0: i32, %arg1: memref<8x1024xf32, #tpu.memory_space<vmem>>, %arg2: memref<128x1024xf32, #tpu.memory_space<vmem>>, %arg3: memref<1x1x128xf32, #tpu.memory_space<vmem>>, %arg4: memref<1x128xf32, #tpu.memory_space<vmem>>, %arg5: memref<8x1024xf32, #tpu.memory_space<vmem>>) attributes {dimension_semantics = [#tpu.dimension_semantics<arbitrary>], iteration_bounds = array<i64: 1>, scalar_prefetch = 0 : i64, scratch_operands = 0 : i64, tpu.core_type = #tpu.core_type<tc>, window_params = [{transform_indices = @transform_0, window_bounds = array<i64: 8, 1024>}, {pipeline_mode = #tpu.pipeline_mode<synchronous>, transform_indices = @transform_1, window_bounds = array<i64: 128, 1024>}, {transform_indices = @transform_2, window_bounds = array<i64: 1, 1, 128>}, {pipeline_mode = #tpu.pipeline_mode<synchronous>, transform_indices = @transform_3, window_bounds = array<i64: 1, 128>}, {transform_indices = @transform_4, window_bounds = array<i64: 8, 1024>}]} {
    %c0 = arith.constant 0 : index
    %c0_0 = arith.constant 0 : index
    %0 = vector.load %arg2[%c0, %c0_0] : memref<128x1024xf32, #tpu.memory_space<vmem>>, vector<128x1024xf32>
    %c0_1 = arith.constant 0 : index
    %c0_2 = arith.constant 0 : index
    %1 = vector.load %arg1[%c0_1, %c0_2] : memref<8x1024xf32, #tpu.memory_space<vmem>>, vector<8x1024xf32>
    %cst = arith.constant dense<0.000000e+00> : vector<8x128xf32>
    %2 = tpu.matmul %1, %0, %cst {dimension_numbers = #tpu.dot_dimension_numbers<[1], [1], [0], [0], [0, 0, 1, 0], [], []>} : vector<8x1024xf32>, vector<128x1024xf32>, vector<8x128xf32> -> vector<8x128xf32>
    %3 = vector.shape_cast %2 : vector<8x128xf32> to vector<1x8x128xf32>
    %c0_3 = arith.constant 0 : index
    %c0_4 = arith.constant 0 : index
    %c0_5 = arith.constant 0 : index
    %4 = vector.load %arg3[%c0_3, %c0_4, %c0_5] : memref<1x1x128xf32, #tpu.memory_space<vmem>>, vector<1x1x128xf32>
    %5 = vector.broadcast %4 : vector<1x1x128xf32> to vector<1x8x128xf32>
    %6 = arith.addf %3, %5 : vector<1x8x128xf32>
    %7 = math.tanh %6 : vector<1x8x128xf32>
    %8 = arith.mulf %7, %7 : vector<1x8x128xf32>
    %cst_6 = arith.constant 1.000000e+00 : f32
    %9 = vector.broadcast %cst_6 : f32 to vector<1x8x128xf32>
    %10 = arith.subf %9, %8 : vector<1x8x128xf32>
    %11 = vector.shape_cast %10 : vector<1x8x128xf32> to vector<8x128xf32>
    %c0_7 = arith.constant 0 : index
    %c0_8 = arith.constant 0 : index
    %12 = vector.load %arg4[%c0_7, %c0_8] : memref<1x128xf32, #tpu.memory_space<vmem>>, vector<1x128xf32>
    %13 = vector.broadcast %12 : vector<1x128xf32> to vector<8x128xf32>
    %14 = arith.mulf %11, %13 : vector<8x128xf32>
    %cst_9 = arith.constant dense<0.000000e+00> : vector<8x1024xf32>
    %15 = tpu.matmul %14, %0, %cst_9 {dimension_numbers = #tpu.dot_dimension_numbers<[1], [0], [0], [1], [0, 0, 1, 1], [], []>} : vector<8x128xf32>, vector<128x1024xf32>, vector<8x1024xf32> -> vector<8x1024xf32>
    %c0_10 = arith.constant 0 : index
    %c0_11 = arith.constant 0 : index
    %16 = vector.load %arg5[%c0_10, %c0_11] : memref<8x1024xf32, #tpu.memory_space<vmem>>, vector<8x1024xf32>
    tpu.vector_store %arg5[%c0_10, %c0_11], %15 {strides = array<i32>} : memref<8x1024xf32, #tpu.memory_space<vmem>>, vector<8x1024xf32>,
    return
  }
  func.func @transform_0(%arg0: i32) -> (i32, i32) {
    %c0_i32 = arith.constant 0 : i32
    %c0_i32_0 = arith.constant 0 : i32
    return %arg0, %c0_i32 : i32, i32
  }
  func.func @transform_1(%arg0: i32) -> (i32, i32) {
    %c0_i32 = arith.constant 0 : i32
    %c0_i32_0 = arith.constant 0 : i32
    %c0_i32_1 = arith.constant 0 : i32
    return %c0_i32, %c0_i32_0 : i32, i32
  }
  func.func @transform_2(%arg0: i32) -> (i32, i32, i32) {
    %c0_i32 = arith.constant 0 : i32
    %c0_i32_0 = arith.constant 0 : i32
    %c0_i32_1 = arith.constant 0 : i32
    return %arg0, %c0_i32, %c0_i32_0 : i32, i32, i32
  }
  func.func @transform_3(%arg0: i32) -> (i32, i32) {
    %c0_i32 = arith.constant 0 : i32
    %c0_i32_0 = arith.constant 0 : i32
    %c0_i32_1 = arith.constant 0 : i32
    return %c0_i32, %c0_i32_0 : i32, i32
  }
  func.func @transform_4(%arg0: i32) -> (i32, i32) {
    %c0_i32 = arith.constant 0 : i32
    %c0_i32_0 = arith.constant 0 : i32
    return %arg0, %c0_i32 : i32, i32
  }
}

</mosaic_0001>

<bundles_post_ra>
// kernel: tpu_custom_call.1
= control target key start
LH: loop header
LB: loop body
LE: loop exit
PB: predicated region body
PF: predicated region fallthrough
CT: control target
= control target key end

     0   :  { %9 = vsyncpa [#allocation3], 0  ;;  %s1187_s0 = inlined_call_operand.hbm [shape: f32[8,1024], index: 0, kind: input, shape index: {}]   ;;  %s1188_s1 = inlined_call_operand.hbm [shape: f32[128,1024], index: 1, kind: input, shape index: {}]   ;;  %s1189_s2 = inlined_call_operand.vmem [shape: f32[1,1,128], index: 2, kind: input, shape index: {}]   ;;  %s1190_s3 = inlined_call_operand.vmem [shape: f32[1,128], index: 3, kind: input, shape index: {}]   ;;  %s1191_s4 = inlined_call_operand.hbm [shape: f32[8,1024], index: 4, kind: output, shape index: {}]  }
   0x1   :  { %10 = vsyncpa [#allocation6], 0 }
   0x2   :  { %11 = vsyncpa [#allocation4], 0  ;;  %s17_s17 = sshll.u32 %s1187_s0, 4  ;;  %s630_s18 = smov [#allocation2]   ;;  %s18_s17 = int_to_ptr.hbm [resolvable:$true] %s17_s17 }
   0x3   :  { %s19_s19 = sshll.u32 %s630_s18, 4  ;;  %s27_s22 = sshll.u32 %s1188_s1, 4  ;;  %s20_s19 = int_to_ptr.vmem [resolvable:$true] %s19_s19  ;;  %s28_s22 = int_to_ptr.hbm [resolvable:$true] %s27_s22 }
   0x4   :  { %22 = dma.hbm_to_vmem [thread:$0]  %s18_s17, 1024, %s20_s19, [#allocation3]  }
   0x5   :  { %s631_s23 = smov [#allocation5]   ;;  %s632_s25 = smov 1024  }
   0x6   :  { %s29_s24 = sshll.u32 %s631_s23, 4  ;;  %s633_s26 = smov 64   ;;  %s30_s24 = int_to_ptr.vmem [resolvable:$true] %s29_s24 }
   0x7   :  { %35 = dma.hbm_to_vmem [thread:$0]  %s28_s22, 16384, %s30_s24, [#allocation6], %s632_s25, %s632_s25, %s633_s26  }
   0x8   :  { %624 = dma.done.wait [#allocation3], 1024  }
   0x9   :  { %625 = vsyncadd [#allocation3], 4294966272 }
   0xa   :  { %626 = dma.done.wait [#allocation6], 16384  }
   0xb   :  { %627 = vsyncadd [#allocation6], 4294950912  ;;  %v666_v0 = vld [vmem:[#allocation5 + $0x3c0] sm:$0xff]  ;;  %v668_v1 = vld [vmem:[#allocation5 + $0x3d0] sm:$0xff]  ;;  %s532_s5 = sshll.u32 %s1191_s4, 4  ;;  %s533_s5 = int_to_ptr.hbm [resolvable:$true] %s532_s5 }
   0xc   :  { %v670_v2 = vld [vmem:[#allocation5 + $0x3c8] sm:$0xff]  ;;  %184 = vmatpush.xpose.msra.mxu0 %v666_v0  ;;  %224 = vmatpush.xpose.msra.mxu2 %v668_v1  ;;  %v674_v3 = vld [vmem:[#allocation5 + $0x3d8] sm:$0xff]  ;;  %v678_v4 = vld [vmem:[#allocation5 + $0x380] sm:$0xff] }
   0xd   :  { %204 = vmatpush.xpose.msra.mxu1 %v670_v2  ;;  %244 = vmatpush.xpose.msra.mxu3 %v674_v3  ;;  %v680_v5 = vld [vmem:[#allocation5 + $0x390] sm:$0xff]  ;;  %v682_v6 = vld [vmem:[#allocation5 + $0x388] sm:$0xff]  ;;  %v684_v7 = vld [vmem:[#allocation5 + $0x398] sm:$0xff] }
   0xe   :  { %v690_v8 = vld [vmem:[#allocation5 + $0x340] sm:$0xff]  ;;  %v692_v9 = vld [vmem:[#allocation5 + $0x350] sm:$0xff]  ;;  %v694_v10 = vld [vmem:[#allocation5 + $0x348] sm:$0xff] }
   0xf   :  { %v696_v11 = vld [vmem:[#allocation5 + $0x358] sm:$0xff]  ;;  %v702_v12 = vld [vmem:[#allocation5 + $0x300] sm:$0xff]  ;;  %v704_v13 = vld [vmem:[#allocation5 + $0x310] sm:$0xff] }
  0x10   :  { %185 = vmatpush.xpose.msra.mxu0 %v678_v4  ;;  %225 = vmatpush.xpose.msra.mxu2 %v680_v5  ;;  %v706_v14 = vld [vmem:[#allocation5 + $0x308] sm:$0xff]  ;;  %v708_v15 = vld [vmem:[#allocation5 + $0x318] sm:$0xff]  ;;  %v714_v16 = vld [vmem:[#allocation5 + $0x2c0] sm:$0xff] }
  0x11   :  { %205 = vmatpush.xpose.msra.mxu1 %v682_v6  ;;  %245 = vmatpush.xpose.msra.mxu3 %v684_v7  ;;  %v716_v17 = vld [vmem:[#allocation5 + $0x2d0] sm:$0xff]  ;;  %v718_v18 = vld [vmem:[#allocation5 + $0x2c8] sm:$0xff]  ;;  %v720_v19 = vld [vmem:[#allocation5 + $0x2d8] sm:$0xff] }
  0x12   :  { %v726_v20 = vld [vmem:[#allocation5 + $0x280] sm:$0xff]  ;;  %v728_v21 = vld [vmem:[#allocation5 + $0x290] sm:$0xff]  ;;  %v730_v22 = vld [vmem:[#allocation5 + $0x288] sm:$0xff] }
  0x13   :  { %v732_v23 = vld [vmem:[#allocation5 + $0x298] sm:$0xff]  ;;  %v738_v24 = vld [vmem:[#allocation5 + $0x240] sm:$0xff]  ;;  %v740_v25 = vld [vmem:[#allocation5 + $0x250] sm:$0xff] }
  0x14   :  { %186 = vmatpush.xpose.msra.mxu0 %v690_v8  ;;  %226 = vmatpush.xpose.msra.mxu2 %v692_v9  ;;  %v742_v26 = vld [vmem:[#allocation5 + $0x248] sm:$0xff]  ;;  %v744_v27 = vld [vmem:[#allocation5 + $0x258] sm:$0xff]  ;;  %v750_v28 = vld [vmem:[#allocation5 + $0x200] sm:$0xff] }
  0x15   :  { %206 = vmatpush.xpose.msra.mxu1 %v694_v10  ;;  %246 = vmatpush.xpose.msra.mxu3 %v696_v11  ;;  %v752_v29 = vld [vmem:[#allocation5 + $0x210] sm:$0xff]  ;;  %v754_v30 = vld [vmem:[#allocation5 + $0x208] sm:$0xff]  ;;  %v756_v31 = vld [vmem:[#allocation5 + $0x218] sm:$0xff] }
  0x16   :  { %v762_v32 = vld [vmem:[#allocation5 + $0x1c0] sm:$0xff]  ;;  %v764_v33 = vld [vmem:[#allocation5 + $0x1d0] sm:$0xff]  ;;  %v766_v34 = vld [vmem:[#allocation5 + $0x1c8] sm:$0xff] }
  0x17   :  { %v768_v35 = vld [vmem:[#allocation5 + $0x1d8] sm:$0xff]  ;;  %v774_v36 = vld [vmem:[#allocation5 + $0x180] sm:$0xff]  ;;  %v776_v37 = vld [vmem:[#allocation5 + $0x190] sm:$0xff] }
  0x18   :  { %187 = vmatpush.xpose.msra.mxu0 %v702_v12  ;;  %227 = vmatpush.xpose.msra.mxu2 %v704_v13  ;;  %v778_v38 = vld [vmem:[#allocation5 + $0x188] sm:$0xff]  ;;  %v780_v39 = vld [vmem:[#allocation5 + $0x198] sm:$0xff]  ;;  %v786_v40 = vld [vmem:[#allocation5 + $0x140] sm:$0xff] }
  0x19   :  { %207 = vmatpush.xpose.msra.mxu1 %v706_v14  ;;  %247 = vmatpush.xpose.msra.mxu3 %v708_v15  ;;  %v788_v41 = vld [vmem:[#allocation5 + $0x150] sm:$0xff]  ;;  %v790_v42 = vld [vmem:[#allocation5 + $0x148] sm:$0xff]  ;;  %v792_v43 = vld [vmem:[#allocation5 + $0x158] sm:$0xff] }
  0x1a   :  { %v798_v44 = vld [vmem:[#allocation5 + $0x100] sm:$0xff]  ;;  %v800_v45 = vld [vmem:[#allocation5 + $0x110] sm:$0xff]  ;;  %v802_v46 = vld [vmem:[#allocation5 + $0x108] sm:$0xff] }
  0x1b   :  { %v804_v47 = vld [vmem:[#allocation5 + $0x118] sm:$0xff]  ;;  %v810_v48 = vld [vmem:[#allocation5 + $0xc0] sm:$0xff]  ;;  %v812_v49 = vld [vmem:[#allocation5 + $0xd0] sm:$0xff] }
  0x1c   :  { %188 = vmatpush.xpose.msra.mxu0 %v714_v16  ;;  %228 = vmatpush.xpose.msra.mxu2 %v716_v17  ;;  %v814_v50 = vld [vmem:[#allocation5 + $0xc8] sm:$0xff]  ;;  %v816_v51 = vld [vmem:[#allocation5 + $0xd8] sm:$0xff]  ;;  %v822_v52 = vld [vmem:[#allocation5 + $0x80] sm:$0xff] }
  0x1d   :  { %208 = vmatpush.xpose.msra.mxu1 %v718_v18  ;;  %248 = vmatpush.xpose.msra.mxu3 %v720_v19  ;;  %v824_v53 = vld [vmem:[#allocation5 + $0x90] sm:$0xff]  ;;  %v826_v54 = vld [vmem:[#allocation5 + $0x88] sm:$0xff]  ;;  %v828_v55 = vld [vmem:[#allocation5 + $0x98] sm:$0xff] }
  0x1e   :  { %1260 = vst [vmem:[#allocation11_spill] sm:$0xff] %v824_v53  ;;  %v834_v56 = vld [vmem:[#allocation5 + $0x40] sm:$0xff]  ;;  %v836_v57 = vld [vmem:[#allocation5 + $0x50] sm:$0xff]  ;;  %v838_v58 = vld [vmem:[#allocation5 + $0x48] sm:$0xff] }
  0x1f   :  { %1261 = vst [vmem:[#allocation12_spill] sm:$0xff] %v826_v54  ;;  %v840_v59 = vld [vmem:[#allocation5 + $0x58] sm:$0xff]  ;;  %v846_v60 = vld [vmem:[#allocation5] sm:$0xff]  ;;  %v848_v61 = vld [vmem:[#allocation5 + $0x10] sm:$0xff] }
  0x20   :  { %189 = vmatpush.xpose.msra.mxu0 %v726_v20  ;;  %229 = vmatpush.xpose.msra.mxu2 %v728_v21  ;;  %1262 = vst [vmem:[#allocation13_spill] sm:$0xff] %v828_v55  ;;  %v850_v62 = vld [vmem:[#allocation5 + $0x3e0] sm:$0xff]  ;;  %v852_v63 = vld [vmem:[#allocation5 + $0x3f0] sm:$0xff] }
  0x21   :  { %209 = vmatpush.xpose.msra.mxu1 %v730_v22  ;;  %249 = vmatpush.xpose.msra.mxu3 %v732_v23  ;;  %1263 = vst [vmem:[#allocation14_spill] sm:$0xff] %v834_v56 }
  0x22   :  { %1264 = vst [vmem:[#allocation15_spill] sm:$0xff] %v836_v57 }
  0x23   :  { %1265 = vst [vmem:[#allocation16_spill] sm:$0xff] %v838_v58 }
  0x24   :  { %190 = vmatpush.xpose.msra.mxu0 %v738_v24  ;;  %230 = vmatpush.xpose.msra.mxu2 %v740_v25  ;;  %1266 = vst [vmem:[#allocation17_spill] sm:$0xff] %v840_v59 }
  0x25   :  { %210 = vmatpush.xpose.msra.mxu1 %v742_v26  ;;  %250 = vmatpush.xpose.msra.mxu3 %v744_v27  ;;  %1267 = vst [vmem:[#allocation18_spill] sm:$0xff] %v846_v60 }
  0x26   :  { %1268 = vst [vmem:[#allocation19_spill] sm:$0xff] %v848_v61 }
  0x27   :  { %1269 = vst [vmem:[#allocation20_spill] sm:$0xff] %v850_v62 }
  0x28   :  { %191 = vmatpush.xpose.msra.mxu0 %v750_v28  ;;  %231 = vmatpush.xpose.msra.mxu2 %v752_v29  ;;  %1270 = vst [vmem:[#allocation21_spill] sm:$0xff] %v852_v63 }
  0x29   :  { %211 = vmatpush.xpose.msra.mxu1 %v754_v30  ;;  %251 = vmatpush.xpose.msra.mxu3 %v756_v31 }
  0x2c   :  { %192 = vmatpush.xpose.msra.mxu0 %v762_v32  ;;  %232 = vmatpush.xpose.msra.mxu2 %v764_v33 }
  0x2d   :  { %212 = vmatpush.xpose.msra.mxu1 %v766_v34  ;;  %252 = vmatpush.xpose.msra.mxu3 %v768_v35 }
  0x30   :  { %193 = vmatpush.xpose.msra.mxu0 %v774_v36  ;;  %233 = vmatpush.xpose.msra.mxu2 %v776_v37 }
  0x31   :  { %213 = vmatpush.xpose.msra.mxu1 %v778_v38  ;;  %253 = vmatpush.xpose.msra.mxu3 %v780_v39 }
  0x34   :  { %194 = vmatpush.xpose.msra.mxu0 %v786_v40  ;;  %234 = vmatpush.xpose.msra.mxu2 %v788_v41 }
  0x35   :  { %214 = vmatpush.xpose.msra.mxu1 %v790_v42  ;;  %254 = vmatpush.xpose.msra.mxu3 %v792_v43 }
  0x38   :  { %195 = vmatpush.xpose.msra.mxu0 %v798_v44  ;;  %235 = vmatpush.xpose.msra.mxu2 %v800_v45 }
  0x39   :  { %215 = vmatpush.xpose.msra.mxu1 %v802_v46  ;;  %255 = vmatpush.xpose.msra.mxu3 %v804_v47 }
  0x3c   :  { %196 = vmatpush.xpose.msra.mxu0 %v810_v48  ;;  %236 = vmatpush.xpose.msra.mxu2 %v812_v49 }
  0x3d   :  { %216 = vmatpush.xpose.msra.mxu1 %v814_v50  ;;  %256 = vmatpush.xpose.msra.mxu3 %v816_v51 }
  0x40   :  { %197 = vmatpush.xpose.msra.mxu0 %v822_v52  ;;  %237 = vmatpush.xpose.msra.mxu2 %v824_v53  ;;  %v856_v53 = vld [vmem:[#allocation5 + $0x18] sm:$0xff] }
  0x41   :  { %217 = vmatpush.xpose.msra.mxu1 %v826_v54  ;;  %257 = vmatpush.xpose.msra.mxu3 %v828_v55  ;;  %v854_v55 = vld [vmem:[#allocation5 + $0x8] sm:$0xff]  ;;  %1272 = vst [vmem:[#allocation23_spill] sm:$0xff] %v856_v53  ;;  %v936_v54 = vld [vmem:[#allocation5 + $0x278] sm:$0xff] }
  0x42   :  { %1271 = vst [vmem:[#allocation22_spill] sm:$0xff] %v854_v55 }
  0x43   :  { %1296 = vst [vmem:[#allocation47_spill] sm:$0xff] %v936_v54 }
  0x44   :  { %198 = vmatpush.xpose.msra.mxu0 %v834_v56  ;;  %238 = vmatpush.xpose.msra.mxu2 %v836_v57  ;;  %v860_v57 = vld [vmem:[#allocation5 + $0x3e8] sm:$0xff]  ;;  %v870_v56 = vld [vmem:[#allocation5 + $0x3b0] sm:$0xff] }
  0x45   :  { %218 = vmatpush.xpose.msra.mxu1 %v838_v58  ;;  %258 = vmatpush.xpose.msra.mxu3 %v840_v59  ;;  %1273 = vst [vmem:[#allocation24_spill] sm:$0xff] %v860_v57  ;;  %v862_v58 = vld [vmem:[#allocation5 + $0x3f8] sm:$0xff]  ;;  %v868_v59 = vld [vmem:[#allocation5 + $0x3a0] sm:$0xff] }
  0x46   :  { %1274 = vst [vmem:[#allocation25_spill] sm:$0xff] %v862_v58 }
  0x47   :  { %1275 = vst [vmem:[#allocation26_spill] sm:$0xff] %v868_v59 }
  0x48   :  { %199 = vmatpush.xpose.msra.mxu0 %v846_v60  ;;  %239 = vmatpush.xpose.msra.mxu2 %v848_v61  ;;  %1276 = vst [vmem:[#allocation27_spill] sm:$0xff] %v870_v56  ;;  %v874_v61 = vld [vmem:[#allocation5 + $0x3a8] sm:$0xff]  ;;  %v876_v60 = vld [vmem:[#allocation5 + $0x3b8] sm:$0xff] }
  0x49   :  { %219 = vmatpush.xpose.msra.mxu1 %v854_v55  ;;  %259 = vmatpush.xpose.msra.mxu3 %v856_v53  ;;  %1277 = vst [vmem:[#allocation28_spill] sm:$0xff] %v874_v61  ;;  %v886_v53 = vld [vmem:[#allocation5 + $0x368] sm:$0xff] }
  0x4a   :  { %1278 = vst [vmem:[#allocation29_spill] sm:$0xff] %v876_v60  ;;  %v934_v55 = vld [vmem:[#allocation5 + $0x268] sm:$0xff] }
  0x4b   :  { %1281 = vst [vmem:[#allocation32_spill] sm:$0xff] %v886_v53 }
  0x4c   :  { %264 = vmatpush.xpose.msrb.mxu0 %v850_v62  ;;  %304 = vmatpush.xpose.msrb.mxu2 %v852_v63  ;;  %v880_v63 = vld [vmem:[#allocation5 + $0x360] sm:$0xff]  ;;  %v882_v62 = vld [vmem:[#allocation5 + $0x370] sm:$0xff] }
  0x4d   :  { %284 = vmatpush.xpose.msrb.mxu1 %v860_v57  ;;  %324 = vmatpush.xpose.msrb.mxu3 %v862_v58  ;;  %1279 = vst [vmem:[#allocation30_spill] sm:$0xff] %v880_v63  ;;  %v888_v57 = vld [vmem:[#allocation5 + $0x378] sm:$0xff]  ;;  %v892_v58 = vld [vmem:[#allocation5 + $0x320] sm:$0xff] }
  0x4e   :  { %1280 = vst [vmem:[#allocation31_spill] sm:$0xff] %v882_v62 }
  0x4f   :  { %1282 = vst [vmem:[#allocation33_spill] sm:$0xff] %v888_v57 }
  0x50   :  { %265 = vmatpush.xpose.msrb.mxu0 %v868_v59  ;;  %305 = vmatpush.xpose.msrb.mxu2 %v870_v56  ;;  %1283 = vst [vmem:[#allocation34_spill] sm:$0xff] %v892_v58  ;;  %v894_v59 = vld [vmem:[#allocation5 + $0x330] sm:$0xff]  ;;  %v898_v56 = vld [vmem:[#allocation5 + $0x328] sm:$0xff] }
  0x51   :  { %285 = vmatpush.xpose.msrb.mxu1 %v874_v61  ;;  %325 = vmatpush.xpose.msrb.mxu3 %v876_v60  ;;  %1284 = vst [vmem:[#allocation35_spill] sm:$0xff] %v894_v59  ;;  %v900_v61 = vld [vmem:[#allocation5 + $0x338] sm:$0xff]  ;;  %v904_v60 = vld [vmem:[#allocation5 + $0x2e0] sm:$0xff] }
  0x52   :  { %1285 = vst [vmem:[#allocation36_spill] sm:$0xff] %v898_v56 }
  0x53   :  { %1286 = vst [vmem:[#allocation37_spill] sm:$0xff] %v900_v61 }
  0x54   :  { %266 = vmatpush.xpose.msrb.mxu0 %v880_v63  ;;  %306 = vmatpush.xpose.msrb.mxu2 %v882_v62  ;;  %1287 = vst [vmem:[#allocation38_spill] sm:$0xff] %v904_v60  ;;  %v906_v63 = vld [vmem:[#allocation5 + $0x2f0] sm:$0xff]  ;;  %v910_v62 = vld [vmem:[#allocation5 + $0x2e8] sm:$0xff] }
  0x55   :  { %286 = vmatpush.xpose.msrb.mxu1 %v886_v53  ;;  %326 = vmatpush.xpose.msrb.mxu3 %v888_v57  ;;  %1288 = vst [vmem:[#allocation39_spill] sm:$0xff] %v906_v63  ;;  %v912_v53 = vld [vmem:[#allocation5 + $0x2f8] sm:$0xff]  ;;  %v916_v57 = vld [vmem:[#allocation5 + $0x2a0] sm:$0xff] }
  0x56   :  { %1289 = vst [vmem:[#allocation40_spill] sm:$0xff] %v910_v62 }
  0x57   :  { %1290 = vst [vmem:[#allocation41_spill] sm:$0xff] %v912_v53 }
  0x58   :  { %267 = vmatpush.xpose.msrb.mxu0 %v892_v58  ;;  %307 = vmatpush.xpose.msrb.mxu2 %v894_v59  ;;  %1291 = vst [vmem:[#allocation42_spill] sm:$0xff] %v916_v57  ;;  %v918_v58 = vld [vmem:[#allocation5 + $0x2b0] sm:$0xff]  ;;  %v922_v59 = vld [vmem:[#allocation5 + $0x2a8] sm:$0xff] }
  0x59   :  { %287 = vmatpush.xpose.msrb.mxu1 %v898_v56  ;;  %327 = vmatpush.xpose.msrb.mxu3 %v900_v61  ;;  %1292 = vst [vmem:[#allocation43_spill] sm:$0xff] %v918_v58  ;;  %v924_v56 = vld [vmem:[#allocation5 + $0x2b8] sm:$0xff]  ;;  %v178_v61 = vld [vmem:[#allocation2 + $0x10] sm:$0xff] }
  0x5a   :  { %1293 = vst [vmem:[#allocation44_spill] sm:$0xff] %v922_v59  ;;  %240 = vmatmul.f32.vlgmr.msra.gmra.mxu2 %v178_v61  ;;  %v942_v61 = vld [vmem:[#allocation5 + $0x230] sm:$0xff] }
  0x5b   :  { %1294 = vst [vmem:[#allocation45_spill] sm:$0xff] %v924_v56 }
  0x5c   :  { %268 = vmatpush.xpose.msrb.mxu0 %v904_v60  ;;  %308 = vmatpush.xpose.msrb.mxu2 %v906_v63  ;;  %v928_v60 = vld [vmem:[#allocation5 + $0x260] sm:$0xff]  ;;  %v930_v63 = vld [vmem:[#allocation5 + $0x270] sm:$0xff]  ;;  %1298 = vst [vmem:[#allocation49_spill] sm:$0xff] %v942_v61 }
  0x5d   :  { %288 = vmatpush.xpose.msrb.mxu1 %v910_v62  ;;  %328 = vmatpush.xpose.msrb.mxu3 %v912_v53  ;;  %1295 = vst [vmem:[#allocation46_spill] sm:$0xff] %v930_v63  ;;  %v176_v62 = vld [vmem:[#allocation2] sm:$0xff]  ;;  %v179_v53 = vld [vmem:[#allocation2 + $0x18] sm:$0xff] }
  0x5e   :  { %200 = vmatmul.f32.vlgmr.msra.gmra.mxu0 %v176_v62  ;;  %260 = vmatmul.f32.vlgmr.msra.gmra.mxu3 %v179_v53  ;;  %v952_v53 = vld [vmem:[#allocation5 + $0x1e0] sm:$0xff]  ;;  %v954_v62 = vld [vmem:[#allocation5 + $0x1f0] sm:$0xff] }
  0x5f   :  { %1301 = vst [vmem:[#allocation52_spill] sm:$0xff] %v952_v53 }
  0x60   :  { %269 = vmatpush.xpose.msrb.mxu0 %v916_v57  ;;  %309 = vmatpush.xpose.msrb.mxu2 %v918_v58  ;;  %v177_v58 = vld [vmem:[#allocation2 + $0x8] sm:$0xff]  ;;  %v940_v57 = vld [vmem:[#allocation5 + $0x220] sm:$0xff]  ;;  %1302 = vst [vmem:[#allocation53_spill] sm:$0xff] %v954_v62 }
  0x61   :  { %289 = vmatpush.xpose.msrb.mxu1 %v922_v59  ;;  %329 = vmatpush.xpose.msrb.mxu3 %v924_v56  ;;  %1297 = vst [vmem:[#allocation48_spill] sm:$0xff] %v940_v57  ;;  %v946_v56 = vld [vmem:[#allocation5 + $0x228] sm:$0xff]  ;;  %v948_v59 = vld [vmem:[#allocation5 + $0x238] sm:$0xff] }
  0x62   :  { %220 = vmatmul.f32.vlgmr.msra.gmra.mxu1 %v177_v58  ;;  %1299 = vst [vmem:[#allocation50_spill] sm:$0xff] %v946_v56  ;;  %v958_v58 = vld [vmem:[#allocation5 + $0x1e8] sm:$0xff] }
  0x63   :  { %1300 = vst [vmem:[#allocation51_spill] sm:$0xff] %v948_v59 }
  0x64   :  { %270 = vmatpush.xpose.msrb.mxu0 %v928_v60  ;;  %310 = vmatpush.xpose.msrb.mxu2 %v930_v63  ;;  %1303 = vst [vmem:[#allocation54_spill] sm:$0xff] %v958_v58  ;;  %v960_v63 = vld [vmem:[#allocation5 + $0x1f8] sm:$0xff] }
  0x65   :  { %290 = vmatpush.xpose.msrb.mxu1 %v934_v55  ;;  %330 = vmatpush.xpose.msrb.mxu3 %v936_v54  ;;  %1304 = vst [vmem:[#allocation55_spill] sm:$0xff] %v960_v63  ;;  %v964_v54 = vld [vmem:[#allocation5 + $0x1a0] sm:$0xff] }
  0x66   :  { %1305 = vst [vmem:[#allocation56_spill] sm:$0xff] %v964_v54 }
  0x68   :  { %271 = vmatpush.xpose.msrb.mxu0 %v940_v57  ;;  %311 = vmatpush.xpose.msrb.mxu2 %v942_v61  ;;  %v966_v57 = vld [vmem:[#allocation5 + $0x1b0] sm:$0xff]  ;;  %v970_v61 = vld [vmem:[#allocation5 + $0x1a8] sm:$0xff] }
  0x69   :  { %291 = vmatpush.xpose.msrb.mxu1 %v946_v56  ;;  %331 = vmatpush.xpose.msrb.mxu3 %v948_v59  ;;  %1306 = vst [vmem:[#allocation57_spill] sm:$0xff] %v966_v57  ;;  %v972_v56 = vld [vmem:[#allocation5 + $0x1b8] sm:$0xff]  ;;  %v976_v59 = vld [vmem:[#allocation5 + $0x160] sm:$0xff] }
  0x6a   :  { %1307 = vst [vmem:[#allocation58_spill] sm:$0xff] %v970_v61 }
  0x6b   :  { %1308 = vst [vmem:[#allocation59_spill] sm:$0xff] %v972_v56 }
  0x6c   :  { %272 = vmatpush.xpose.msrb.mxu0 %v952_v53  ;;  %312 = vmatpush.xpose.msrb.mxu2 %v954_v62  ;;  %1309 = vst [vmem:[#allocation60_spill] sm:$0xff] %v976_v59  ;;  %v978_v53 = vld [vmem:[#allocation5 + $0x170] sm:$0xff]  ;;  %v982_v62 = vld [vmem:[#allocation5 + $0x168] sm:$0xff] }
  0x6d   :  { %292 = vmatpush.xpose.msrb.mxu1 %v958_v58  ;;  %332 = vmatpush.xpose.msrb.mxu3 %v960_v63  ;;  %1310 = vst [vmem:[#allocation61_spill] sm:$0xff] %v978_v53  ;;  %v984_v58 = vld [vmem:[#allocation5 + $0x178] sm:$0xff]  ;;  %v988_v63 = vld [vmem:[#allocation5 + $0x120] sm:$0xff] }
  0x6e   :  { %1311 = vst [vmem:[#allocation62_spill] sm:$0xff] %v982_v62 }
  0x6f   :  { %1312 = vst [vmem:[#allocation63_spill] sm:$0xff] %v984_v58 }
  0x70   :  { %273 = vmatpush.xpose.msrb.mxu0 %v964_v54  ;;  %313 = vmatpush.xpose.msrb.mxu2 %v966_v57  ;;  %1313 = vst [vmem:[#allocation64_spill] sm:$0xff] %v988_v63  ;;  %v990_v54 = vld [vmem:[#allocation5 + $0x130] sm:$0xff]  ;;  %v994_v57 = vld [vmem:[#allocation5 + $0x128] sm:$0xff] }
  0x71   :  { %293 = vmatpush.xpose.msrb.mxu1 %v970_v61  ;;  %333 = vmatpush.xpose.msrb.mxu3 %v972_v56  ;;  %1314 = vst [vmem:[#allocation65_spill] sm:$0xff] %v990_v54  ;;  %v996_v61 = vld [vmem:[#allocation5 + $0x138] sm:$0xff]  ;;  %v1000_v56 = vld [vmem:[#allocation5 + $0xe0] sm:$0xff] }
  0x72   :  { %1315 = vst [vmem:[#allocation66_spill] sm:$0xff] %v994_v57 }
  0x73   :  { %1316 = vst [vmem:[#allocation67_spill] sm:$0xff] %v996_v61 }
  0x74   :  { %274 = vmatpush.xpose.msrb.mxu0 %v976_v59  ;;  %314 = vmatpush.xpose.msrb.mxu2 %v978_v53  ;;  %1317 = vst [vmem:[#allocation68_spill] sm:$0xff] %v1000_v56  ;;  %v1002_v59 = vld [vmem:[#allocation5 + $0xf0] sm:$0xff]  ;;  %v1006_v53 = vld [vmem:[#allocation5 + $0xe8] sm:$0xff] }
  0x75   :  { %294 = vmatpush.xpose.msrb.mxu1 %v982_v62  ;;  %334 = vmatpush.xpose.msrb.mxu3 %v984_v58  ;;  %1318 = vst [vmem:[#allocation69_spill] sm:$0xff] %v1002_v59  ;;  %v1008_v62 = vld [vmem:[#allocation5 + $0xf8] sm:$0xff]  ;;  %v1012_v58 = vld [vmem:[#allocation5 + $0xa0] sm:$0xff] }
  0x76   :  { %1319 = vst [vmem:[#allocation70_spill] sm:$0xff] %v1006_v53 }
  0x77   :  { %1320 = vst [vmem:[#allocation71_spill] sm:$0xff] %v1008_v62 }
  0x78   :  { %275 = vmatpush.xpose.msrb.mxu0 %v988_v63  ;;  %315 = vmatpush.xpose.msrb.mxu2 %v990_v54  ;;  %1321 = vst [vmem:[#allocation72_spill] sm:$0xff] %v1012_v58  ;;  %v1014_v63 = vld [vmem:[#allocation5 + $0xb0] sm:$0xff]  ;;  %v1018_v54 = vld [vmem:[#allocation5 + $0xa8] sm:$0xff] }
  0x79   :  { %295 = vmatpush.xpose.msrb.mxu1 %v994_v57  ;;  %335 = vmatpush.xpose.msrb.mxu3 %v996_v61  ;;  %1322 = vst [vmem:[#allocation73_spill] sm:$0xff] %v1014_v63  ;;  %v1020_v57 = vld [vmem:[#allocation5 + $0xb8] sm:$0xff]  ;;  %v1024_v61 = vld [vmem:[#allocation5 + $0x60] sm:$0xff] }
  0x7a   :  { %1323 = vst [vmem:[#allocation74_spill] sm:$0xff] %v1018_v54 }
  0x7b   :  { %1324 = vst [vmem:[#allocation75_spill] sm:$0xff] %v1020_v57 }
  0x7c   :  { %276 = vmatpush.xpose.msrb.mxu0 %v1000_v56  ;;  %316 = vmatpush.xpose.msrb.mxu2 %v1002_v59  ;;  %1325 = vst [vmem:[#allocation76_spill] sm:$0xff] %v1024_v61  ;;  %v1026_v56 = vld [vmem:[#allocation5 + $0x70] sm:$0xff]  ;;  %v1030_v59 = vld [vmem:[#allocation5 + $0x68] sm:$0xff] }
  0x7d   :  { %296 = vmatpush.xpose.msrb.mxu1 %v1006_v53  ;;  %336 = vmatpush.xpose.msrb.mxu3 %v1008_v62  ;;  %1326 = vst [vmem:[#allocation77_spill] sm:$0xff] %v1026_v56  ;;  %v1032_v53 = vld [vmem:[#allocation5 + $0x78] sm:$0xff]  ;;  %v1036_v62 = vld [vmem:[#allocation5 + $0x20] sm:$0xff] }
  0x7e   :  { %1327 = vst [vmem:[#allocation78_spill] sm:$0xff] %v1032_v53 }
  0x80   :  { %277 = vmatpush.xpose.msrb.mxu0 %v1012_v58  ;;  %317 = vmatpush.xpose.msrb.mxu2 %v1014_v63  ;;  %v1038_v58 = vld [vmem:[#allocation5 + $0x30] sm:$0xff]  ;;  %v1042_v63 = vld [vmem:[#allocation5 + $0x28] sm:$0xff] }
  0x81   :  { %297 = vmatpush.xpose.msrb.mxu1 %v1018_v54  ;;  %337 = vmatpush.xpose.msrb.mxu3 %v1020_v57  ;;  %v1044_v54 = vld [vmem:[#allocation5 + $0x38] sm:$0xff]  ;;  %v180_v57 = vld [vmem:[#allocation2 + $0x20] sm:$0xff] }
  0x84   :  { %278 = vmatpush.xpose.msrb.mxu0 %v1024_v61  ;;  %318 = vmatpush.xpose.msrb.mxu2 %v1026_v56  ;;  %v182_v61 = vld [vmem:[#allocation2 + $0x30] sm:$0xff]  ;;  %v181_v56 = vld [vmem:[#allocation2 + $0x28] sm:$0xff] }
  0x85   :  { %298 = vmatpush.xpose.msrb.mxu1 %v1030_v59  ;;  %338 = vmatpush.xpose.msrb.mxu3 %v1032_v53  ;;  %v183_v53 = vld [vmem:[#allocation2 + $0x38] sm:$0xff] }
  0x88   :  { %279 = vmatpush.xpose.msrb.mxu0 %v1036_v62  ;;  %319 = vmatpush.xpose.msrb.mxu2 %v1038_v58 }
  0x89   :  { %299 = vmatpush.xpose.msrb.mxu1 %v1042_v63  ;;  %339 = vmatpush.xpose.msrb.mxu3 %v1044_v54 }
  0x8b   :  { %280 = vmatmul.f32.vlgmr.msrb.gmra.mxu0 %v180_v57  ;;  %320 = vmatmul.f32.vlgmr.msrb.gmra.mxu2 %v182_v61  ;;  %v1383_v57 = vld [vmem:[#allocation65_spill] sm:$0xff]  ;;  %v1385_v61 = vld [vmem:[#allocation68_spill] sm:$0xff] }
  0x8c   :  { %357 = vmatpush.msra.mxu0 %v666_v0  ;;  %397 = vmatpush.msra.mxu2 %v668_v1  ;;  %v1328_v0 = vld [vmem:[#allocation12_spill] sm:$0xff]  ;;  %v1329_v1 = vld [vmem:[#allocation11_spill] sm:$0xff] }
  0x8d   :  { %377 = vmatpush.msra.mxu1 %v670_v2  ;;  %417 = vmatpush.msra.mxu3 %v674_v3  ;;  %v1330_v2 = vld [vmem:[#allocation13_spill] sm:$0xff]  ;;  %v1331_v3 = vld [vmem:[#allocation14_spill] sm:$0xff] }
  0x8e   :  { %300 = vmatmul.f32.vlgmr.msrb.gmra.mxu1 %v181_v56  ;;  %340 = vmatmul.f32.vlgmr.msrb.gmra.mxu3 %v183_v53  ;;  %v1382_v56 = vld [vmem:[#allocation66_spill] sm:$0xff] }
  0x8f   :  { %358 = vmatpush.msra.mxu0 %v678_v4  ;;  %378 = vmatpush.msra.mxu1 %v682_v6  ;;  %v1332_v4 = vld [vmem:[#allocation16_spill] sm:$0xff]  ;;  %v1334_v6 = vld [vmem:[#allocation17_spill] sm:$0xff]  ;;  %v1386_v53 = vld [vmem:[#allocation70_spill] sm:$0xff] }
  0x90   :  { %398 = vmatpush.msra.mxu2 %v680_v5  ;;  %418 = vmatpush.msra.mxu3 %v684_v7  ;;  %v1333_v5 = vld [vmem:[#allocation15_spill] sm:$0xff]  ;;  %v1335_v7 = vld [vmem:[#allocation18_spill] sm:$0xff] }
  0x91   :  { %359 = vmatpush.msra.mxu0 %v690_v8  ;;  %379 = vmatpush.msra.mxu1 %v694_v10  ;;  %v1336_v8 = vld [vmem:[#allocation22_spill] sm:$0xff]  ;;  %v1338_v10 = vld [vmem:[#allocation23_spill] sm:$0xff] }
  0x92   :  { %399 = vmatpush.msra.mxu2 %v692_v9  ;;  %419 = vmatpush.msra.mxu3 %v696_v11  ;;  %v1337_v9 = vld [vmem:[#allocation19_spill] sm:$0xff]  ;;  %v1339_v11 = vld [vmem:[#allocation20_spill] sm:$0xff] }
  0x93   :  { %360 = vmatpush.msra.mxu0 %v702_v12  ;;  %380 = vmatpush.msra.mxu1 %v706_v14  ;;  %v1340_v12 = vld [vmem:[#allocation24_spill] sm:$0xff]  ;;  %v1342_v14 = vld [vmem:[#allocation25_spill] sm:$0xff] }
  0x94   :  { %400 = vmatpush.msra.mxu2 %v704_v13  ;;  %420 = vmatpush.msra.mxu3 %v708_v15  ;;  %v1341_v13 = vld [vmem:[#allocation21_spill] sm:$0xff]  ;;  %v1343_v15 = vld [vmem:[#allocation26_spill] sm:$0xff] }
  0x95   :  { %361 = vmatpush.msra.mxu0 %v714_v16  ;;  %381 = vmatpush.msra.mxu1 %v718_v18  ;;  %v1344_v16 = vld [vmem:[#allocation28_spill] sm:$0xff]  ;;  %v1346_v18 = vld [vmem:[#allocation29_spill] sm:$0xff] }
  0x96   :  { %401 = vmatpush.msra.mxu2 %v716_v17  ;;  %421 = vmatpush.msra.mxu3 %v720_v19  ;;  %v1345_v17 = vld [vmem:[#allocation27_spill] sm:$0xff]  ;;  %v1347_v19 = vld [vmem:[#allocation30_spill] sm:$0xff] }
  0x97   :  { %362 = vmatpush.msra.mxu0 %v726_v20  ;;  %382 = vmatpush.msra.mxu1 %v730_v22  ;;  %v1348_v20 = vld [vmem:[#allocation32_spill] sm:$0xff]  ;;  %v1350_v22 = vld [vmem:[#allocation33_spill] sm:$0xff] }
  0x98   :  { %402 = vmatpush.msra.mxu2 %v728_v21  ;;  %422 = vmatpush.msra.mxu3 %v732_v23  ;;  %v1349_v21 = vld [vmem:[#allocation31_spill] sm:$0xff]  ;;  %v1351_v23 = vld [vmem:[#allocation34_spill] sm:$0xff] }
  0x99   :  { %363 = vmatpush.msra.mxu0 %v738_v24  ;;  %383 = vmatpush.msra.mxu1 %v742_v26  ;;  %v1352_v24 = vld [vmem:[#allocation36_spill] sm:$0xff]  ;;  %v1354_v26 = vld [vmem:[#allocation37_spill] sm:$0xff] }
  0x9a   :  { %403 = vmatpush.msra.mxu2 %v740_v25  ;;  %423 = vmatpush.msra.mxu3 %v744_v27  ;;  %v1353_v25 = vld [vmem:[#allocation35_spill] sm:$0xff]  ;;  %v1355_v27 = vld [vmem:[#allocation38_spill] sm:$0xff] }
  0x9b   :  { %364 = vmatpush.msra.mxu0 %v750_v28  ;;  %384 = vmatpush.msra.mxu1 %v754_v30  ;;  %v1356_v28 = vld [vmem:[#allocation40_spill] sm:$0xff]  ;;  %v1358_v30 = vld [vmem:[#allocation41_spill] sm:$0xff] }
  0x9c   :  { %404 = vmatpush.msra.mxu2 %v752_v29  ;;  %424 = vmatpush.msra.mxu3 %v756_v31  ;;  %v1357_v29 = vld [vmem:[#allocation39_spill] sm:$0xff]  ;;  %v1359_v31 = vld [vmem:[#allocation42_spill] sm:$0xff] }
  0x9d   :  { %365 = vmatpush.msra.mxu0 %v762_v32  ;;  %385 = vmatpush.msra.mxu1 %v766_v34  ;;  %v1360_v32 = vld [vmem:[#allocation44_spill] sm:$0xff]  ;;  %v1362_v34 = vld [vmem:[#allocation45_spill] sm:$0xff] }
  0x9e   :  { %405 = vmatpush.msra.mxu2 %v764_v33  ;;  %425 = vmatpush.msra.mxu3 %v768_v35  ;;  %v1361_v33 = vld [vmem:[#allocation43_spill] sm:$0xff]  ;;  %v1363_v35 = vld [vmem:[#allocation46_spill] sm:$0xff] }
  0x9f   :  { %366 = vmatpush.msra.mxu0 %v774_v36  ;;  %386 = vmatpush.msra.mxu1 %v778_v38  ;;  %v1364_v36 = vld [vmem:[#allocation47_spill] sm:$0xff]  ;;  %v1366_v38 = vld [vmem:[#allocation50_spill] sm:$0xff] }
  0xa0   :  { %406 = vmatpush.msra.mxu2 %v776_v37  ;;  %426 = vmatpush.msra.mxu3 %v780_v39  ;;  %v1365_v37 = vld [vmem:[#allocation48_spill] sm:$0xff]  ;;  %v1367_v39 = vld [vmem:[#allocation49_spill] sm:$0xff] }
  0xa1   :  { %367 = vmatpush.msra.mxu0 %v786_v40  ;;  %387 = vmatpush.msra.mxu1 %v790_v42  ;;  %v1368_v40 = vld [vmem:[#allocation51_spill] sm:$0xff]  ;;  %v1370_v42 = vld [vmem:[#allocation54_spill] sm:$0xff] }
  0xa2   :  { %407 = vmatpush.msra.mxu2 %v788_v41  ;;  %427 = vmatpush.msra.mxu3 %v792_v43  ;;  %v1369_v41 = vld [vmem:[#allocation52_spill] sm:$0xff]  ;;  %v1371_v43 = vld [vmem:[#allocation53_spill] sm:$0xff] }
  0xa3   :  { %368 = vmatpush.msra.mxu0 %v798_v44  ;;  %388 = vmatpush.msra.mxu1 %v802_v46  ;;  %v1372_v44 = vld [vmem:[#allocation55_spill] sm:$0xff]  ;;  %v1374_v46 = vld [vmem:[#allocation58_spill] sm:$0xff] }
  0xa4   :  { %408 = vmatpush.msra.mxu2 %v800_v45  ;;  %428 = vmatpush.msra.mxu3 %v804_v47  ;;  %v1373_v45 = vld [vmem:[#allocation56_spill] sm:$0xff]  ;;  %v1375_v47 = vld [vmem:[#allocation57_spill] sm:$0xff] }
  0xa5   :  { %369 = vmatpush.msra.mxu0 %v810_v48  ;;  %389 = vmatpush.msra.mxu1 %v814_v50  ;;  %v1376_v48 = vld [vmem:[#allocation59_spill] sm:$0xff]  ;;  %v1378_v50 = vld [vmem:[#allocation62_spill] sm:$0xff] }
  0xa6   :  { %409 = vmatpush.msra.mxu2 %v812_v49  ;;  %429 = vmatpush.msra.mxu3 %v816_v51  ;;  %v1377_v49 = vld [vmem:[#allocation60_spill] sm:$0xff]  ;;  %v1379_v51 = vld [vmem:[#allocation61_spill] sm:$0xff] }
  0xa7   :  { %370 = vmatpush.msra.mxu0 %v822_v52  ;;  %390 = vmatpush.msra.mxu1 %v1328_v0  ;;  %v1380_v52 = vld [vmem:[#allocation63_spill] sm:$0xff]  ;;  %v1387_v0 = vld [vmem:[#allocation69_spill] sm:$0xff] }
  0xa8   :  { %410 = vmatpush.msra.mxu2 %v1329_v1  ;;  %430 = vmatpush.msra.mxu3 %v1330_v2  ;;  %v1388_v1 = vld [vmem:[#allocation71_spill] sm:$0xff]  ;;  %v1389_v2 = vld [vmem:[#allocation72_spill] sm:$0xff] }
  0xa9   :  { %371 = vmatpush.msra.mxu0 %v1331_v3  ;;  %391 = vmatpush.msra.mxu1 %v1332_v4  ;;  %v1390_v3 = vld [vmem:[#allocation74_spill] sm:$0xff]  ;;  %v1391_v4 = vld [vmem:[#allocation73_spill] sm:$0xff] }
  0xaa   :  { %411 = vmatpush.msra.mxu2 %v1333_v5  ;;  %431 = vmatpush.msra.mxu3 %v1334_v6  ;;  %v1392_v5 = vld [vmem:[#allocation75_spill] sm:$0xff]  ;;  %v1393_v6 = vld [vmem:[#allocation76_spill] sm:$0xff] }
  0xab   :  { %372 = vmatpush.msra.mxu0 %v1335_v7  ;;  %392 = vmatpush.msra.mxu1 %v1336_v8  ;;  %v1394_v7 = vld [vmem:[#allocation77_spill] sm:$0xff]  ;;  %v1395_v8 = vld [vmem:[#allocation78_spill] sm:$0xff] }
  0xac   :  { %412 = vmatpush.msra.mxu2 %v1337_v9  ;;  %432 = vmatpush.msra.mxu3 %v1338_v10 }
  0xad   :  { %437 = vmatpush.msrb.mxu0 %v1339_v11  ;;  %457 = vmatpush.msrb.mxu1 %v1340_v12 }
  0xae   :  { %477 = vmatpush.msrb.mxu2 %v1341_v13  ;;  %497 = vmatpush.msrb.mxu3 %v1342_v14 }
  0xaf   :  { %438 = vmatpush.msrb.mxu0 %v1343_v15  ;;  %458 = vmatpush.msrb.mxu1 %v1344_v16 }
  0xb0   :  { %478 = vmatpush.msrb.mxu2 %v1345_v17  ;;  %498 = vmatpush.msrb.mxu3 %v1346_v18 }
  0xb1   :  { %439 = vmatpush.msrb.mxu0 %v1347_v19  ;;  %459 = vmatpush.msrb.mxu1 %v1348_v20 }
  0xb2   :  { %479 = vmatpush.msrb.mxu2 %v1349_v21  ;;  %499 = vmatpush.msrb.mxu3 %v1350_v22 }
  0xb3   :  { %440 = vmatpush.msrb.mxu0 %v1351_v23  ;;  %460 = vmatpush.msrb.mxu1 %v1352_v24  ;;  %v549_v23 = vld [vmem:[%s1190_s3] ss:$0 sm:$0xff] }
  0xb4   :  { %480 = vmatpush.msrb.mxu2 %v1353_v25  ;;  %500 = vmatpush.msrb.mxu3 %v1354_v26 }
  0xb5   :  { %441 = vmatpush.msrb.mxu0 %v1355_v27  ;;  %461 = vmatpush.msrb.mxu1 %v1356_v28 }
  0xb6   :  { %481 = vmatpush.msrb.mxu2 %v1357_v29  ;;  %501 = vmatpush.msrb.mxu3 %v1358_v30 }
  0xb7   :  { %442 = vmatpush.msrb.mxu0 %v1359_v31  ;;  %462 = vmatpush.msrb.mxu1 %v1360_v32 }
  0xb8   :  { %482 = vmatpush.msrb.mxu2 %v1361_v33  ;;  %502 = vmatpush.msrb.mxu3 %v1362_v34 }
  0xb9   :  { %443 = vmatpush.msrb.mxu0 %v928_v60  ;;  %463 = vmatpush.msrb.mxu1 %v934_v55  ;;  %v1381_v55 = vld [vmem:[#allocation64_spill] sm:$0xff]  ;;  %v1384_v60 = vld [vmem:[#allocation67_spill] sm:$0xff] }
  0xba   :  { %483 = vmatpush.msrb.mxu2 %v1363_v35  ;;  %503 = vmatpush.msrb.mxu3 %v1364_v36 }
  0xbb   :  { %444 = vmatpush.msrb.mxu0 %v1365_v37  ;;  %464 = vmatpush.msrb.mxu1 %v1366_v38 }
  0xbc   :  { %484 = vmatpush.msrb.mxu2 %v1367_v39  ;;  %504 = vmatpush.msrb.mxu3 %v1368_v40 }
  0xbd   :  { %445 = vmatpush.msrb.mxu0 %v1369_v41  ;;  %465 = vmatpush.msrb.mxu1 %v1370_v42 }
  0xbe   :  { %485 = vmatpush.msrb.mxu2 %v1371_v43  ;;  %505 = vmatpush.msrb.mxu3 %v1372_v44 }
  0xbf   :  { %446 = vmatpush.msrb.mxu0 %v1373_v45  ;;  %466 = vmatpush.msrb.mxu1 %v1374_v46 }
  0xc0   :  { %486 = vmatpush.msrb.mxu2 %v1375_v47  ;;  %506 = vmatpush.msrb.mxu3 %v1376_v48 }
  0xc1   :  { %447 = vmatpush.msrb.mxu0 %v1377_v49  ;;  %467 = vmatpush.msrb.mxu1 %v1378_v50 }
  0xc2   :  { %487 = vmatpush.msrb.mxu2 %v1379_v51  ;;  %507 = vmatpush.msrb.mxu3 %v1380_v52 }
  0xc3   :  { %448 = vmatpush.msrb.mxu0 %v1381_v55  ;;  %468 = vmatpush.msrb.mxu1 %v1382_v56 }
  0xc4   :  { %488 = vmatpush.msrb.mxu2 %v1383_v57  ;;  %508 = vmatpush.msrb.mxu3 %v1384_v60 }
  0xc5   :  { %449 = vmatpush.msrb.mxu0 %v1385_v61  ;;  %469 = vmatpush.msrb.mxu1 %v1386_v53 }
  0xc6   :  { %489 = vmatpush.msrb.mxu2 %v1387_v0  ;;  %509 = vmatpush.msrb.mxu3 %v1388_v1 }
  0xc7   :  { %450 = vmatpush.msrb.mxu0 %v1389_v2  ;;  %470 = vmatpush.msrb.mxu1 %v1390_v3 }
  0xc8   :  { %490 = vmatpush.msrb.mxu2 %v1391_v4  ;;  %510 = vmatpush.msrb.mxu3 %v1392_v5 }
  0xc9   :  { %451 = vmatpush.msrb.mxu0 %v1393_v6  ;;  %471 = vmatpush.msrb.mxu1 %v1030_v59 }
  0xca   :  { %491 = vmatpush.msrb.mxu2 %v1394_v7  ;;  %511 = vmatpush.msrb.mxu3 %v1395_v8 }
  0xcb   :  { %452 = vmatpush.msrb.mxu0 %v1036_v62  ;;  %472 = vmatpush.msrb.mxu1 %v1042_v63  ;;  %v548_v63 = vld [vmem:[%s1189_s2] ss:$0 sm:$0xff]  ;;  %s634_s2 = smov [#allocation7]  }
  0xcc   :  { %492 = vmatpush.msrb.mxu2 %v1038_v58  ;;  %512 = vmatpush.msrb.mxu3 %v1044_v54  ;;  %s530_s3 = sshll.u32 %s634_s2, 4  ;;  %s531_s3 = int_to_ptr.vmem [resolvable:$true] %s530_s3 }
  0xdb   :  { %v201_v10 = vpop.f32.mrf.mxu0 }
  0xdd   :  { %v241_v12 = vpop.f32.mrf.mxu2 }
  0xdf   :  { %v221_v9 = vpop.f32.mrf.mxu1 }
  0xe0   :  { %v222_v11 = vadd.f32 %v221_v9, %v201_v10 }
  0xe1   :  { %v261_v14 = vpop.f32.mrf.mxu3 }
  0xe2   :  { %v242_v13 = vadd.f32 %v241_v12, %v222_v11 }
  0xe4   :  { %v262_v15 = vadd.f32 %v261_v14, %v242_v13 }
 0x108   :  { %v281_v59 = vpop.f32.mrf.mxu0 }
 0x109   :  { %v282_v16 = vadd.f32 %v281_v59, %v262_v15 }
 0x10b   :  { %v301_v17 = vpop.f32.mrf.mxu1 }
 0x10c   :  { %v302_v18 = vadd.f32 %v301_v17, %v282_v16 }
 0x10e   :  { %v321_v19 = vpop.f32.mrf.mxu2 }
 0x10f   :  { %v322_v20 = vadd.f32 %v321_v19, %v302_v18 }
 0x111   :  { %v341_v62 = vpop.f32.mrf.mxu3 }
 0x112   :  { %v342_v58 = vadd.f32 %v341_v62, %v322_v20 }
 0x114   :  { %v348_v54 = vadd.f32 %v548_v63, %v342_v58 }
 0x116   :  { %550 = vtanh.f32 %v348_v54 }
 0x11c   :  { %v551_v21 = vpop.eup %550 }
 0x11d   :  { %v350_v22 = vmul.f32 %v551_v21, %v551_v21 }
 0x11f   :  { %v351_v24 = vsub.f32 1.0, %v350_v22 }
 0x121   :  { %v356_v25 = vmul.f32 %v549_v23, %v351_v24 }
 0x123   :  { %373 = vmatmul.f32.vlgmr.msra.gmra.mxu0 %v356_v25  ;;  %393 = vmatmul.f32.vlgmr.msra.gmra.mxu1 %v356_v25 }
 0x124   :  { %413 = vmatmul.f32.vlgmr.msra.gmra.mxu2 %v356_v25  ;;  %433 = vmatmul.f32.vlgmr.msra.gmra.mxu3 %v356_v25 }
 0x12b   :  { %453 = vmatmul.f32.vlgmr.msrb.gmra.mxu0 %v356_v25  ;;  %473 = vmatmul.f32.vlgmr.msrb.gmra.mxu1 %v356_v25 }
 0x12c   :  { %493 = vmatmul.f32.vlgmr.msrb.gmra.mxu2 %v356_v25  ;;  %513 = vmatmul.f32.vlgmr.msrb.gmra.mxu3 %v356_v25 }
 0x1a0   :  { %v374_v26 = vpop.f32.mrf.mxu0  ;;  %v394_v27 = vpop.f32.mrf.mxu1 }
 0x1a1   :  { %517 = vst [vmem:[#allocation7] sm:$0xff] %v374_v26 }
 0x1a2   :  { %518 = vst [vmem:[#allocation7 + $0x8] sm:$0xff] %v394_v27 }
 0x1a7   :  { %v414_v28 = vpop.f32.mrf.mxu2  ;;  %v434_v29 = vpop.f32.mrf.mxu3 }
 0x1a8   :  { %519 = vst [vmem:[#allocation7 + $0x10] sm:$0xff] %v414_v28  ;;  %v454_v30 = vpop.f32.mrf.mxu0  ;;  %v474_v31 = vpop.f32.mrf.mxu1 }
 0x1a9   :  { %520 = vst [vmem:[#allocation7 + $0x18] sm:$0xff] %v434_v29 }
 0x1aa   :  { %521 = vst [vmem:[#allocation7 + $0x20] sm:$0xff] %v454_v30 }
 0x1ab   :  { %522 = vst [vmem:[#allocation7 + $0x28] sm:$0xff] %v474_v31 }
 0x1af   :  { %v494_v32 = vpop.f32.mrf.mxu2  ;;  %v514_v33 = vpop.f32.mrf.mxu3 }
 0x1b0   :  { %523 = vst [vmem:[#allocation7 + $0x30] sm:$0xff] %v494_v32 }
 0x1b1   :  { %524 = vst [vmem:[#allocation7 + $0x38] sm:$0xff] %v514_v33 }
 0x1b2   :  { %535 = dma.vmem_to_hbm [thread:$0]  %s531_s3, 1024, %s533_s5, [#allocation4]  }
 0x1b3   :  { %628 = dma.done.wait [#allocation4], 1024  }
 0x1b4   :  { %629 = vsyncadd [#allocation4], 4294966272 }
 0x1b5   :  { %540 = vsyncpa [#allocation3], 1 }
 0x1b6   :  { %541 = vsyncpa [#allocation6], 1 }
 0x1b7   :  { %542 = vsyncpa [#allocation4], 1 }

// kernel: tpu_custom_call.1
= control target key start
LH: loop header
LB: loop body
LE: loop exit
PB: predicated region body
PF: predicated region fallthrough
CT: control target
= control target key end

     0   :  { %9 = vsyncpa [#allocation3], 0  ;;  %s1187_s0 = inlined_call_operand.hbm [shape: f32[8,1024], index: 0, kind: input, shape index: {}]   ;;  %s1188_s1 = inlined_call_operand.hbm [shape: f32[128,1024], index: 1, kind: input, shape index: {}]   ;;  %s1189_s2 = inlined_call_operand.vmem [shape: f32[1,1,128], index: 2, kind: input, shape index: {}]   ;;  %s1190_s3 = inlined_call_operand.vmem [shape: f32[1,128], index: 3, kind: input, shape index: {}]   ;;  %s1191_s4 = inlined_call_operand.hbm [shape: f32[8,1024], index: 4, kind: output, shape index: {}]  }
   0x1   :  { %10 = vsyncpa [#allocation6], 0 }
   0x2   :  { %11 = vsyncpa [#allocation4], 0  ;;  %s17_s17 = sshll.u32 %s1187_s0, 4  ;;  %s630_s18 = smov [#allocation2]   ;;  %s18_s17 = int_to_ptr.hbm [resolvable:$true] %s17_s17 }
   0x3   :  { %s19_s19 = sshll.u32 %s630_s18, 4  ;;  %s27_s22 = sshll.u32 %s1188_s1, 4  ;;  %s20_s19 = int_to_ptr.vmem [resolvable:$true] %s19_s19  ;;  %s28_s22 = int_to_ptr.hbm [resolvable:$true] %s27_s22 }
   0x4   :  { %22 = dma.hbm_to_vmem [thread:$0]  %s18_s17, 1024, %s20_s19, [#allocation3]  }
   0x5   :  { %s631_s23 = smov [#allocation5]   ;;  %s632_s25 = smov 1024  }
   0x6   :  { %s29_s24 = sshll.u32 %s631_s23, 4  ;;  %s633_s26 = smov 64   ;;  %s30_s24 = int_to_ptr.vmem [resolvable:$true] %s29_s24 }
   0x7   :  { %35 = dma.hbm_to_vmem [thread:$0]  %s28_s22, 16384, %s30_s24, [#allocation6], %s632_s25, %s632_s25, %s633_s26  }
   0x8   :  { %624 = dma.done.wait [#allocation3], 1024  }
   0x9   :  { %625 = vsyncadd [#allocation3], 4294966272 }
   0xa   :  { %626 = dma.done.wait [#allocation6], 16384  }
   0xb   :  { %627 = vsyncadd [#allocation6], 4294950912  ;;  %v666_v0 = vld [vmem:[#allocation5 + $0x3c0] sm:$0xff]  ;;  %v668_v1 = vld [vmem:[#allocation5 + $0x3d0] sm:$0xff]  ;;  %s532_s5 = sshll.u32 %s1191_s4, 4  ;;  %s533_s5 = int_to_ptr.hbm [resolvable:$true] %s532_s5 }
   0xc   :  { %v670_v2 = vld [vmem:[#allocation5 + $0x3c8] sm:$0xff]  ;;  %184 = vmatpush.xpose.msra.mxu0 %v666_v0  ;;  %224 = vmatpush.xpose.msra.mxu2 %v668_v1  ;;  %v674_v3 = vld [vmem:[#allocation5 + $0x3d8] sm:$0xff]  ;;  %v678_v4 = vld [vmem:[#allocation5 + $0x380] sm:$0xff] }
   0xd   :  { %204 = vmatpush.xpose.msra.mxu1 %v670_v2  ;;  %244 = vmatpush.xpose.msra.mxu3 %v674_v3  ;;  %v680_v5 = vld [vmem:[#allocation5 + $0x390] sm:$0xff]  ;;  %v682_v6 = vld [vmem:[#allocation5 + $0x388] sm:$0xff]  ;;  %v684_v7 = vld [vmem:[#allocation5 + $0x398] sm:$0xff] }
   0xe   :  { %v690_v8 = vld [vmem:[#allocation5 + $0x340] sm:$0xff]  ;;  %v692_v9 = vld [vmem:[#allocation5 + $0x350] sm:$0xff]  ;;  %v694_v10 = vld [vmem:[#allocation5 + $0x348] sm:$0xff] }
   0xf   :  { %v696_v11 = vld [vmem:[#allocation5 + $0x358] sm:$0xff]  ;;  %v702_v12 = vld [vmem:[#allocation5 + $0x300] sm:$0xff]  ;;  %v704_v13 = vld [vmem:[#allocation5 + $0x310] sm:$0xff] }
  0x10   :  { %185 = vmatpush.xpose.msra.mxu0 %v678_v4  ;;  %225 = vmatpush.xpose.msra.mxu2 %v680_v5  ;;  %v706_v14 = vld [vmem:[#allocation5 + $0x308] sm:$0xff]  ;;  %v708_v15 = vld [vmem:[#allocation5 + $0x318] sm:$0xff]  ;;  %v714_v16 = vld [vmem:[#allocation5 + $0x2c0] sm:$0xff] }
  0x11   :  { %205 = vmatpush.xpose.msra.mxu1 %v682_v6  ;;  %245 = vmatpush.xpose.msra.mxu3 %v684_v7  ;;  %v716_v17 = vld [vmem:[#allocation5 + $0x2d0] sm:$0xff]  ;;  %v718_v18 = vld [vmem:[#allocation5 + $0x2c8] sm:$0xff]  ;;  %v720_v19 = vld [vmem:[#allocation5 + $0x2d8] sm:$0xff] }
  0x12   :  { %v726_v20 = vld [vmem:[#allocation5 + $0x280] sm:$0xff]  ;;  %v728_v21 = vld [vmem:[#allocation5 + $0x290] sm:$0xff]  ;;  %v730_v22 = vld [vmem:[#allocation5 + $0x288] sm:$0xff] }
  0x13   :  { %v732_v23 = vld [vmem:[#allocation5 + $0x298] sm:$0xff]  ;;  %v738_v24 = vld [vmem:[#allocation5 + $0x240] sm:$0xff]  ;;  %v740_v25 = vld [vmem:[#allocation5 + $0x250] sm:$0xff] }
  0x14   :  { %186 = vmatpush.xpose.msra.mxu0 %v690_v8  ;;  %226 = vmatpush.xpose.msra.mxu2 %v692_v9  ;;  %v742_v26 = vld [vmem:[#allocation5 + $0x248] sm:$0xff]  ;;  %v744_v27 = vld [vmem:[#allocation5 + $0x258] sm:$0xff]  ;;  %v750_v28 = vld [vmem:[#allocation5 + $0x200] sm:$0xff] }
  0x15   :  { %206 = vmatpush.xpose.msra.mxu1 %v694_v10  ;;  %246 = vmatpush.xpose.msra.mxu3 %v696_v11  ;;  %v752_v29 = vld [vmem:[#allocation5 + $0x210] sm:$0xff]  ;;  %v754_v30 = vld [vmem:[#allocation5 + $0x208] sm:$0xff]  ;;  %v756_v31 = vld [vmem:[#allocation5 + $0x218] sm:$0xff] }
  0x16   :  { %v762_v32 = vld [vmem:[#allocation5 + $0x1c0] sm:$0xff]  ;;  %v764_v33 = vld [vmem:[#allocation5 + $0x1d0] sm:$0xff]  ;;  %v766_v34 = vld [vmem:[#allocation5 + $0x1c8] sm:$0xff] }
  0x17   :  { %v768_v35 = vld [vmem:[#allocation5 + $0x1d8] sm:$0xff]  ;;  %v774_v36 = vld [vmem:[#allocation5 + $0x180] sm:$0xff]  ;;  %v776_v37 = vld [vmem:[#allocation5 + $0x190] sm:$0xff] }
  0x18   :  { %187 = vmatpush.xpose.msra.mxu0 %v702_v12  ;;  %227 = vmatpush.xpose.msra.mxu2 %v704_v13  ;;  %v778_v38 = vld [vmem:[#allocation5 + $0x188] sm:$0xff]  ;;  %v780_v39 = vld [vmem:[#allocation5 + $0x198] sm:$0xff]  ;;  %v786_v40 = vld [vmem:[#allocation5 + $0x140] sm:$0xff] }
  0x19   :  { %207 = vmatpush.xpose.msra.mxu1 %v706_v14  ;;  %247 = vmatpush.xpose.msra.mxu3 %v708_v15  ;;  %v788_v41 = vld [vmem:[#allocation5 + $0x150] sm:$0xff]  ;;  %v790_v42 = vld [vmem:[#allocation5 + $0x148] sm:$0xff]  ;;  %v792_v43 = vld [vmem:[#allocation5 + $0x158] sm:$0xff] }
  0x1a   :  { %v798_v44 = vld [vmem:[#allocation5 + $0x100] sm:$0xff]  ;;  %v800_v45 = vld [vmem:[#allocation5 + $0x110] sm:$0xff]  ;;  %v802_v46 = vld [vmem:[#allocation5 + $0x108] sm:$0xff] }
  0x1b   :  { %v804_v47 = vld [vmem:[#allocation5 + $0x118] sm:$0xff]  ;;  %v810_v48 = vld [vmem:[#allocation5 + $0xc0] sm:$0xff]  ;;  %v812_v49 = vld [vmem:[#allocation5 + $0xd0] sm:$0xff] }
  0x1c   :  { %188 = vmatpush.xpose.msra.mxu0 %v714_v16  ;;  %228 = vmatpush.xpose.msra.mxu2 %v716_v17  ;;  %v814_v50 = vld [vmem:[#allocation5 + $0xc8] sm:$0xff]  ;;  %v816_v51 = vld [vmem:[#allocation5 + $0xd8] sm:$0xff]  ;;  %v822_v52 = vld [vmem:[#allocation5 + $0x80] sm:$0xff] }
  0x1d   :  { %208 = vmatpush.xpose.msra.mxu1 %v718_v18  ;;  %248 = vmatpush.xpose.msra.mxu3 %v720_v19  ;;  %v824_v53 = vld [vmem:[#allocation5 + $0x90] sm:$0xff]  ;;  %v826_v54 = vld [vmem:[#allocation5 + $0x88] sm:$0xff]  ;;  %v828_v55 = vld [vmem:[#allocation5 + $0x98] sm:$0xff] }
  0x1e   :  { %1260 = vst [vmem:[#allocation11_spill] sm:$0xff] %v824_v53  ;;  %v834_v56 = vld [vmem:[#allocation5 + $0x40] sm:$0xff]  ;;  %v836_v57 = vld [vmem:[#allocation5 + $0x50] sm:$0xff]  ;;  %v838_v58 = vld [vmem:[#allocation5 + $0x48] sm:$0xff] }
  0x1f   :  { %1261 = vst [vmem:[#allocation12_spill] sm:$0xff] %v826_v54  ;;  %v840_v59 = vld [vmem:[#allocation5 + $0x58] sm:$0xff]  ;;  %v846_v60 = vld [vmem:[#allocation5] sm:$0xff]  ;;  %v848_v61 = vld [vmem:[#allocation5 + $0x10] sm:$0xff] }
  0x20   :  { %189 = vmatpush.xpose.msra.mxu0 %v726_v20  ;;  %229 = vmatpush.xpose.msra.mxu2 %v728_v21  ;;  %1262 = vst [vmem:[#allocation13_spill] sm:$0xff] %v828_v55  ;;  %v850_v62 = vld [vmem:[#allocation5 + $0x3e0] sm:$0xff]  ;;  %v852_v63 = vld [vmem:[#allocation5 + $0x3f0] sm:$0xff] }
  0x21   :  { %209 = vmatpush.xpose.msra.mxu1 %v730_v22  ;;  %249 = vmatpush.xpose.msra.mxu3 %v732_v23  ;;  %1263 = vst [vmem:[#allocation14_spill] sm:$0xff] %v834_v56 }
  0x22   :  { %1264 = vst [vmem:[#allocation15_spill] sm:$0xff] %v836_v57 }
  0x23   :  { %1265 = vst [vmem:[#allocation16_spill] sm:$0xff] %v838_v58 }
  0x24   :  { %190 = vmatpush.xpose.msra.mxu0 %v738_v24  ;;  %230 = vmatpush.xpose.msra.mxu2 %v740_v25  ;;  %1266 = vst [vmem:[#allocation17_spill] sm:$0xff] %v840_v59 }
  0x25   :  { %210 = vmatpush.xpose.msra.mxu1 %v742_v26  ;;  %250 = vmatpush.xpose.msra.mxu3 %v744_v27  ;;  %1267 = vst [vmem:[#allocation18_spill] sm:$0xff] %v846_v60 }
  0x26   :  { %1268 = vst [vmem:[#allocation19_spill] sm:$0xff] %v848_v61 }
  0x27   :  { %1269 = vst [vmem:[#allocation20_spill] sm:$0xff] %v850_v62 }
  0x28   :  { %191 = vmatpush.xpose.msra.mxu0 %v750_v28  ;;  %231 = vmatpush.xpose.msra.mxu2 %v752_v29  ;;  %1270 = vst [vmem:[#allocation21_spill] sm:$0xff] %v852_v63 }
  0x29   :  { %211 = vmatpush.xpose.msra.mxu1 %v754_v30  ;;  %251 = vmatpush.xpose.msra.mxu3 %v756_v31 }
  0x2c   :  { %192 = vmatpush.xpose.msra.mxu0 %v762_v32  ;;  %232 = vmatpush.xpose.msra.mxu2 %v764_v33 }
  0x2d   :  { %212 = vmatpush.xpose.msra.mxu1 %v766_v34  ;;  %252 = vmatpush.xpose.msra.mxu3 %v768_v35 }
  0x30   :  { %193 = vmatpush.xpose.msra.mxu0 %v774_v36  ;;  %233 = vmatpush.xpose.msra.mxu2 %v776_v37 }
  0x31   :  { %213 = vmatpush.xpose.msra.mxu1 %v778_v38  ;;  %253 = vmatpush.xpose.msra.mxu3 %v780_v39 }
  0x34   :  { %194 = vmatpush.xpose.msra.mxu0 %v786_v40  ;;  %234 = vmatpush.xpose.msra.mxu2 %v788_v41 }
  0x35   :  { %214 = vmatpush.xpose.msra.mxu1 %v790_v42  ;;  %254 = vmatpush.xpose.msra.mxu3 %v792_v43 }
  0x38   :  { %195 = vmatpush.xpose.msra.mxu0 %v798_v44  ;;  %235 = vmatpush.xpose.msra.mxu2 %v800_v45 }
  0x39   :  { %215 = vmatpush.xpose.msra.mxu1 %v802_v46  ;;  %255 = vmatpush.xpose.msra.mxu3 %v804_v47 }
  0x3c   :  { %196 = vmatpush.xpose.msra.mxu0 %v810_v48  ;;  %236 = vmatpush.xpose.msra.mxu2 %v812_v49 }
  0x3d   :  { %216 = vmatpush.xpose.msra.mxu1 %v814_v50  ;;  %256 = vmatpush.xpose.msra.mxu3 %v816_v51 }
  0x40   :  { %197 = vmatpush.xpose.msra.mxu0 %v822_v52  ;;  %237 = vmatpush.xpose.msra.mxu2 %v824_v53  ;;  %v856_v53 = vld [vmem:[#allocation5 + $0x18] sm:$0xff] }
  0x41   :  { %217 = vmatpush.xpose.msra.mxu1 %v826_v54  ;;  %257 = vmatpush.xpose.msra.mxu3 %v828_v55  ;;  %v854_v55 = vld [vmem:[#allocation5 + $0x8] sm:$0xff]  ;;  %1272 = vst [vmem:[#allocation23_spill] sm:$0xff] %v856_v53  ;;  %v936_v54 = vld [vmem:[#allocation5 + $0x278] sm:$0xff] }
  0x42   :  { %1271 = vst [vmem:[#allocation22_spill] sm:$0xff] %v854_v55 }
  0x43   :  { %1296 = vst [vmem:[#allocation47_spill] sm:$0xff] %v936_v54 }
  0x44   :  { %198 = vmatpush.xpose.msra.mxu0 %v834_v56  ;;  %238 = vmatpush.xpose.msra.mxu2 %v836_v57  ;;  %v860_v57 = vld [vmem:[#allocation5 + $0x3e8] sm:$0xff]  ;;  %v870_v56 = vld [vmem:[#allocation5 + $0x3b0] sm:$0xff] }
  0x45   :  { %218 = vmatpush.xpose.msra.mxu1 %v838_v58  ;;  %258 = vmatpush.xpose.msra.mxu3 %v840_v59  ;;  %1273 = vst [vmem:[#allocation24_spill] sm:$0xff] %v860_v57  ;;  %v862_v58 = vld [vmem:[#allocation5 + $0x3f8] sm:$0xff]  ;;  %v868_v59 = vld [vmem:[#allocation5 + $0x3a0] sm:$0xff] }
  0x46   :  { %1274 = vst [vmem:[#allocation25_spill] sm:$0xff] %v862_v58 }
  0x47   :  { %1275 = vst [vmem:[#allocation26_spill] sm:$0xff] %v868_v59 }
  0x48   :  { %199 = vmatpush.xpose.msra.mxu0 %v846_v60  ;;  %239 = vmatpush.xpose.msra.mxu2 %v848_v61  ;;  %1276 = vst [vmem:[#allocation27_spill] sm:$0xff] %v870_v56  ;;  %v874_v61 = vld [vmem:[#allocation5 + $0x3a8] sm:$0xff]  ;;  %v876_v60 = vld [vmem:[#allocation5 + $0x3b8] sm:$0xff] }
  0x49   :  { %219 = vmatpush.xpose.msra.mxu1 %v854_v55  ;;  %259 = vmatpush.xpose.msra.mxu3 %v856_v53  ;;  %1277 = vst [vmem:[#allocation28_spill] sm:$0xff] %v874_v61  ;;  %v886_v53 = vld [vmem:[#allocation5 + $0x368] sm:$0xff] }
  0x4a   :  { %1278 = vst [vmem:[#allocation29_spill] sm:$0xff] %v876_v60  ;;  %v934_v55 = vld [vmem:[#allocation5 + $0x268] sm:$0xff] }
  0x4b   :  { %1281 = vst [vmem:[#allocation32_spill] sm:$0xff] %v886_v53 }
  0x4c   :  { %264 = vmatpush.xpose.msrb.mxu0 %v850_v62  ;;  %304 = vmatpush.xpose.msrb.mxu2 %v852_v63  ;;  %v880_v63 = vld [vmem:[#allocation5 + $0x360] sm:$0xff]  ;;  %v882_v62 = vld [vmem:[#allocation5 + $0x370] sm:$0xff] }
  0x4d   :  { %284 = vmatpush.xpose.msrb.mxu1 %v860_v57  ;;  %324 = vmatpush.xpose.msrb.mxu3 %v862_v58  ;;  %1279 = vst [vmem:[#allocation30_spill] sm:$0xff] %v880_v63  ;;  %v888_v57 = vld [vmem:[#allocation5 + $0x378] sm:$0xff]  ;;  %v892_v58 = vld [vmem:[#allocation5 + $0x320] sm:$0xff] }
  0x4e   :  { %1280 = vst [vmem:[#allocation31_spill] sm:$0xff] %v882_v62 }
  0x4f   :  { %1282 = vst [vmem:[#allocation33_spill] sm:$0xff] %v888_v57 }
  0x50   :  { %265 = vmatpush.xpose.msrb.mxu0 %v868_v59  ;;  %305 = vmatpush.xpose.msrb.mxu2 %v870_v56  ;;  %1283 = vst [vmem:[#allocation34_spill] sm:$0xff] %v892_v58  ;;  %v894_v59 = vld [vmem:[#allocation5 + $0x330] sm:$0xff]  ;;  %v898_v56 = vld [vmem:[#allocation5 + $0x328] sm:$0xff] }
  0x51   :  { %285 = vmatpush.xpose.msrb.mxu1 %v874_v61  ;;  %325 = vmatpush.xpose.msrb.mxu3 %v876_v60  ;;  %1284 = vst [vmem:[#allocation35_spill] sm:$0xff] %v894_v59  ;;  %v900_v61 = vld [vmem:[#allocation5 + $0x338] sm:$0xff]  ;;  %v904_v60 = vld [vmem:[#allocation5 + $0x2e0] sm:$0xff] }
  0x52   :  { %1285 = vst [vmem:[#allocation36_spill] sm:$0xff] %v898_v56 }
  0x53   :  { %1286 = vst [vmem:[#allocation37_spill] sm:$0xff] %v900_v61 }
  0x54   :  { %266 = vmatpush.xpose.msrb.mxu0 %v880_v63  ;;  %306 = vmatpush.xpose.msrb.mxu2 %v882_v62  ;;  %1287 = vst [vmem:[#allocation38_spill] sm:$0xff] %v904_v60  ;;  %v906_v63 = vld [vmem:[#allocation5 + $0x2f0] sm:$0xff]  ;;  %v910_v62 = vld [vmem:[#allocation5 + $0x2e8] sm:$0xff] }
  0x55   :  { %286 = vmatpush.xpose.msrb.mxu1 %v886_v53  ;;  %326 = vmatpush.xpose.msrb.mxu3 %v888_v57  ;;  %1288 = vst [vmem:[#allocation39_spill] sm:$0xff] %v906_v63  ;;  %v912_v53 = vld [vmem:[#allocation5 + $0x2f8] sm:$0xff]  ;;  %v916_v57 = vld [vmem:[#allocation5 + $0x2a0] sm:$0xff] }
  0x56   :  { %1289 = vst [vmem:[#allocation40_spill] sm:$0xff] %v910_v62 }
  0x57   :  { %1290 = vst [vmem:[#allocation41_spill] sm:$0xff] %v912_v53 }
  0x58   :  { %267 = vmatpush.xpose.msrb.mxu0 %v892_v58  ;;  %307 = vmatpush.xpose.msrb.mxu2 %v894_v59  ;;  %1291 = vst [vmem:[#allocation42_spill] sm:$0xff] %v916_v57  ;;  %v918_v58 = vld [vmem:[#allocation5 + $0x2b0] sm:$0xff]  ;;  %v922_v59 = vld [vmem:[#allocation5 + $0x2a8] sm:$0xff] }
  0x59   :  { %287 = vmatpush.xpose.msrb.mxu1 %v898_v56  ;;  %327 = vmatpush.xpose.msrb.mxu3 %v900_v61  ;;  %1292 = vst [vmem:[#allocation43_spill] sm:$0xff] %v918_v58  ;;  %v924_v56 = vld [vmem:[#allocation5 + $0x2b8] sm:$0xff]  ;;  %v178_v61 = vld [vmem:[#allocation2 + $0x10] sm:$0xff] }
  0x5a   :  { %1293 = vst [vmem:[#allocation44_spill] sm:$0xff] %v922_v59  ;;  %240 = vmatmul.f32.vlgmr.msra.gmra.mxu2 %v178_v61  ;;  %v942_v61 = vld [vmem:[#allocation5 + $0x230] sm:$0xff] }
  0x5b   :  { %1294 = vst [vmem:[#allocation45_spill] sm:$0xff] %v924_v56 }
  0x5c   :  { %268 = vmatpush.xpose.msrb.mxu0 %v904_v60  ;;  %308 = vmatpush.xpose.msrb.mxu2 %v906_v63  ;;  %v928_v60 = vld [vmem:[#allocation5 + $0x260] sm:$0xff]  ;;  %v930_v63 = vld [vmem:[#allocation5 + $0x270] sm:$0xff]  ;;  %1298 = vst [vmem:[#allocation49_spill] sm:$0xff] %v942_v61 }
  0x5d   :  { %288 = vmatpush.xpose.msrb.mxu1 %v910_v62  ;;  %328 = vmatpush.xpose.msrb.mxu3 %v912_v53  ;;  %1295 = vst [vmem:[#allocation46_spill] sm:$0xff] %v930_v63  ;;  %v176_v62 = vld [vmem:[#allocation2] sm:$0xff]  ;;  %v179_v53 = vld [vmem:[#allocation2 + $0x18] sm:$0xff] }
  0x5e   :  { %200 = vmatmul.f32.vlgmr.msra.gmra.mxu0 %v176_v62  ;;  %260 = vmatmul.f32.vlgmr.msra.gmra.mxu3 %v179_v53  ;;  %v952_v53 = vld [vmem:[#allocation5 + $0x1e0] sm:$0xff]  ;;  %v954_v62 = vld [vmem:[#allocation5 + $0x1f0] sm:$0xff] }
  0x5f   :  { %1301 = vst [vmem:[#allocation52_spill] sm:$0xff] %v952_v53 }
  0x60   :  { %269 = vmatpush.xpose.msrb.mxu0 %v916_v57  ;;  %309 = vmatpush.xpose.msrb.mxu2 %v918_v58  ;;  %v177_v58 = vld [vmem:[#allocation2 + $0x8] sm:$0xff]  ;;  %v940_v57 = vld [vmem:[#allocation5 + $0x220] sm:$0xff]  ;;  %1302 = vst [vmem:[#allocation53_spill] sm:$0xff] %v954_v62 }
  0x61   :  { %289 = vmatpush.xpose.msrb.mxu1 %v922_v59  ;;  %329 = vmatpush.xpose.msrb.mxu3 %v924_v56  ;;  %1297 = vst [vmem:[#allocation48_spill] sm:$0xff] %v940_v57  ;;  %v946_v56 = vld [vmem:[#allocation5 + $0x228] sm:$0xff]  ;;  %v948_v59 = vld [vmem:[#allocation5 + $0x238] sm:$0xff] }
  0x62   :  { %220 = vmatmul.f32.vlgmr.msra.gmra.mxu1 %v177_v58  ;;  %1299 = vst [vmem:[#allocation50_spill] sm:$0xff] %v946_v56  ;;  %v958_v58 = vld [vmem:[#allocation5 + $0x1e8] sm:$0xff] }
  0x63   :  { %1300 = vst [vmem:[#allocation51_spill] sm:$0xff] %v948_v59 }
  0x64   :  { %270 = vmatpush.xpose.msrb.mxu0 %v928_v60  ;;  %310 = vmatpush.xpose.msrb.mxu2 %v930_v63  ;;  %1303 = vst [vmem:[#allocation54_spill] sm:$0xff] %v958_v58  ;;  %v960_v63 = vld [vmem:[#allocation5 + $0x1f8] sm:$0xff] }
  0x65   :  { %290 = vmatpush.xpose.msrb.mxu1 %v934_v55  ;;  %330 = vmatpush.xpose.msrb.mxu3 %v936_v54  ;;  %1304 = vst [vmem:[#allocation55_spill] sm:$0xff] %v960_v63  ;;  %v964_v54 = vld [vmem:[#allocation5 + $0x1a0] sm:$0xff] }
  0x66   :  { %1305 = vst [vmem:[#allocation56_spill] sm:$0xff] %v964_v54 }
  0x68   :  { %271 = vmatpush.xpose.msrb.mxu0 %v940_v57  ;;  %311 = vmatpush.xpose.msrb.mxu2 %v942_v61  ;;  %v966_v57 = vld [vmem:[#allocation5 + $0x1b0] sm:$0xff]  ;;  %v970_v61 = vld [vmem:[#allocation5 + $0x1a8] sm:$0xff] }
  0x69   :  { %291 = vmatpush.xpose.msrb.mxu1 %v946_v56  ;;  %331 = vmatpush.xpose.msrb.mxu3 %v948_v59  ;;  %1306 = vst [vmem:[#allocation57_spill] sm:$0xff] %v966_v57  ;;  %v972_v56 = vld [vmem:[#allocation5 + $0x1b8] sm:$0xff]  ;;  %v976_v59 = vld [vmem:[#allocation5 + $0x160] sm:$0xff] }
  0x6a   :  { %1307 = vst [vmem:[#allocation58_spill] sm:$0xff] %v970_v61 }
  0x6b   :  { %1308 = vst [vmem:[#allocation59_spill] sm:$0xff] %v972_v56 }
  0x6c   :  { %272 = vmatpush.xpose.msrb.mxu0 %v952_v53  ;;  %312 = vmatpush.xpose.msrb.mxu2 %v954_v62  ;;  %1309 = vst [vmem:[#allocation60_spill] sm:$0xff] %v976_v59  ;;  %v978_v53 = vld [vmem:[#allocation5 + $0x170] sm:$0xff]  ;;  %v982_v62 = vld [vmem:[#allocation5 + $0x168] sm:$0xff] }
  0x6d   :  { %292 = vmatpush.xpose.msrb.mxu1 %v958_v58  ;;  %332 = vmatpush.xpose.msrb.mxu3 %v960_v63  ;;  %1310 = vst [vmem:[#allocation61_spill] sm:$0xff] %v978_v53  ;;  %v984_v58 = vld [vmem:[#allocation5 + $0x178] sm:$0xff]  ;;  %v988_v63 = vld [vmem:[#allocation5 + $0x120] sm:$0xff] }
  0x6e   :  { %1311 = vst [vmem:[#allocation62_spill] sm:$0xff] %v982_v62 }
  0x6f   :  { %1312 = vst [vmem:[#allocation63_spill] sm:$0xff] %v984_v58 }
  0x70   :  { %273 = vmatpush.xpose.msrb.mxu0 %v964_v54  ;;  %313 = vmatpush.xpose.msrb.mxu2 %v966_v57  ;;  %1313 = vst [vmem:[#allocation64_spill] sm:$0xff] %v988_v63  ;;  %v990_v54 = vld [vmem:[#allocation5 + $0x130] sm:$0xff]  ;;  %v994_v57 = vld [vmem:[#allocation5 + $0x128] sm:$0xff] }
  0x71   :  { %293 = vmatpush.xpose.msrb.mxu1 %v970_v61  ;;  %333 = vmatpush.xpose.msrb.mxu3 %v972_v56  ;;  %1314 = vst [vmem:[#allocation65_spill] sm:$0xff] %v990_v54  ;;  %v996_v61 = vld [vmem:[#allocation5 + $0x138] sm:$0xff]  ;;  %v1000_v56 = vld [vmem:[#allocation5 + $0xe0] sm:$0xff] }
  0x72   :  { %1315 = vst [vmem:[#allocation66_spill] sm:$0xff] %v994_v57 }
  0x73   :  { %1316 = vst [vmem:[#allocation67_spill] sm:$0xff] %v996_v61 }
  0x74   :  { %274 = vmatpush.xpose.msrb.mxu0 %v976_v59  ;;  %314 = vmatpush.xpose.msrb.mxu2 %v978_v53  ;;  %1317 = vst [vmem:[#allocation68_spill] sm:$0xff] %v1000_v56  ;;  %v1002_v59 = vld [vmem:[#allocation5 + $0xf0] sm:$0xff]  ;;  %v1006_v53 = vld [vmem:[#allocation5 + $0xe8] sm:$0xff] }
  0x75   :  { %294 = vmatpush.xpose.msrb.mxu1 %v982_v62  ;;  %334 = vmatpush.xpose.msrb.mxu3 %v984_v58  ;;  %1318 = vst [vmem:[#allocation69_spill] sm:$0xff] %v1002_v59  ;;  %v1008_v62 = vld [vmem:[#allocation5 + $0xf8] sm:$0xff]  ;;  %v1012_v58 = vld [vmem:[#allocation5 + $0xa0] sm:$0xff] }
  0x76   :  { %1319 = vst [vmem:[#allocation70_spill] sm:$0xff] %v1006_v53 }
  0x77   :  { %1320 = vst [vmem:[#allocation71_spill] sm:$0xff] %v1008_v62 }
  0x78   :  { %275 = vmatpush.xpose.msrb.mxu0 %v988_v63  ;;  %315 = vmatpush.xpose.msrb.mxu2 %v990_v54  ;;  %1321 = vst [vmem:[#allocation72_spill] sm:$0xff] %v1012_v58  ;;  %v1014_v63 = vld [vmem:[#allocation5 + $0xb0] sm:$0xff]  ;;  %v1018_v54 = vld [vmem:[#allocation5 + $0xa8] sm:$0xff] }
  0x79   :  { %295 = vmatpush.xpose.msrb.mxu1 %v994_v57  ;;  %335 = vmatpush.xpose.msrb.mxu3 %v996_v61  ;;  %1322 = vst [vmem:[#allocation73_spill] sm:$0xff] %v1014_v63  ;;  %v1020_v57 = vld [vmem:[#allocation5 + $0xb8] sm:$0xff]  ;;  %v1024_v61 = vld [vmem:[#allocation5 + $0x60] sm:$0xff] }
  0x7a   :  { %1323 = vst [vmem:[#allocation74_spill] sm:$0xff] %v1018_v54 }
  0x7b   :  { %1324 = vst [vmem:[#allocation75_spill] sm:$0xff] %v1020_v57 }
  0x7c   :  { %276 = vmatpush.xpose.msrb.mxu0 %v1000_v56  ;;  %316 = vmatpush.xpose.msrb.mxu2 %v1002_v59  ;;  %1325 = vst [vmem:[#allocation76_spill] sm:$0xff] %v1024_v61  ;;  %v1026_v56 = vld [vmem:[#allocation5 + $0x70] sm:$0xff]  ;;  %v1030_v59 = vld [vmem:[#allocation5 + $0x68] sm:$0xff] }
  0x7d   :  { %296 = vmatpush.xpose.msrb.mxu1 %v1006_v53  ;;  %336 = vmatpush.xpose.msrb.mxu3 %v1008_v62  ;;  %1326 = vst [vmem:[#allocation77_spill] sm:$0xff] %v1026_v56  ;;  %v1032_v53 = vld [vmem:[#allocation5 + $0x78] sm:$0xff]  ;;  %v1036_v62 = vld [vmem:[#allocation5 + $0x20] sm:$0xff] }
  0x7e   :  { %1327 = vst [vmem:[#allocation78_spill] sm:$0xff] %v1032_v53 }
  0x80   :  { %277 = vmatpush.xpose.msrb.mxu0 %v1012_v58  ;;  %317 = vmatpush.xpose.msrb.mxu2 %v1014_v63  ;;  %v1038_v58 = vld [vmem:[#allocation5 + $0x30] sm:$0xff]  ;;  %v1042_v63 = vld [vmem:[#allocation5 + $0x28] sm:$0xff] }
  0x81   :  { %297 = vmatpush.xpose.msrb.mxu1 %v1018_v54  ;;  %337 = vmatpush.xpose.msrb.mxu3 %v1020_v57  ;;  %v1044_v54 = vld [vmem:[#allocation5 + $0x38] sm:$0xff]  ;;  %v180_v57 = vld [vmem:[#allocation2 + $0x20] sm:$0xff] }
  0x84   :  { %278 = vmatpush.xpose.msrb.mxu0 %v1024_v61  ;;  %318 = vmatpush.xpose.msrb.mxu2 %v1026_v56  ;;  %v182_v61 = vld [vmem:[#allocation2 + $0x30] sm:$0xff]  ;;  %v181_v56 = vld [vmem:[#allocation2 + $0x28] sm:$0xff] }
  0x85   :  { %298 = vmatpush.xpose.msrb.mxu1 %v1030_v59  ;;  %338 = vmatpush.xpose.msrb.mxu3 %v1032_v53  ;;  %v183_v53 = vld [vmem:[#allocation2 + $0x38] sm:$0xff] }
  0x88   :  { %279 = vmatpush.xpose.msrb.mxu0 %v1036_v62  ;;  %319 = vmatpush.xpose.msrb.mxu2 %v1038_v58 }
  0x89   :  { %299 = vmatpush.xpose.msrb.mxu1 %v1042_v63  ;;  %339 = vmatpush.xpose.msrb.mxu3 %v1044_v54 }
  0x8b   :  { %280 = vmatmul.f32.vlgmr.msrb.gmra.mxu0 %v180_v57  ;;  %320 = vmatmul.f32.vlgmr.msrb.gmra.mxu2 %v182_v61  ;;  %v1383_v57 = vld [vmem:[#allocation65_spill] sm:$0xff]  ;;  %v1385_v61 = vld [vmem:[#allocation68_spill] sm:$0xff] }
  0x8c   :  { %357 = vmatpush.msra.mxu0 %v666_v0  ;;  %397 = vmatpush.msra.mxu2 %v668_v1  ;;  %v1328_v0 = vld [vmem:[#allocation12_spill] sm:$0xff]  ;;  %v1329_v1 = vld [vmem:[#allocation11_spill] sm:$0xff] }
  0x8d   :  { %377 = vmatpush.msra.mxu1 %v670_v2  ;;  %417 = vmatpush.msra.mxu3 %v674_v3  ;;  %v1330_v2 = vld [vmem:[#allocation13_spill] sm:$0xff]  ;;  %v1331_v3 = vld [vmem:[#allocation14_spill] sm:$0xff] }
  0x8e   :  { %300 = vmatmul.f32.vlgmr.msrb.gmra.mxu1 %v181_v56  ;;  %340 = vmatmul.f32.vlgmr.msrb.gmra.mxu3 %v183_v53  ;;  %v1382_v56 = vld [vmem:[#allocation66_spill] sm:$0xff] }
  0x8f   :  { %358 = vmatpush.msra.mxu0 %v678_v4  ;;  %378 = vmatpush.msra.mxu1 %v682_v6  ;;  %v1332_v4 = vld [vmem:[#allocation16_spill] sm:$0xff]  ;;  %v1334_v6 = vld [vmem:[#allocation17_spill] sm:$0xff]  ;;  %v1386_v53 = vld [vmem:[#allocation70_spill] sm:$0xff] }
  0x90   :  { %398 = vmatpush.msra.mxu2 %v680_v5  ;;  %418 = vmatpush.msra.mxu3 %v684_v7  ;;  %v1333_v5 = vld [vmem:[#allocation15_spill] sm:$0xff]  ;;  %v1335_v7 = vld [vmem:[#allocation18_spill] sm:$0xff] }
  0x91   :  { %359 = vmatpush.msra.mxu0 %v690_v8  ;;  %379 = vmatpush.msra.mxu1 %v694_v10  ;;  %v1336_v8 = vld [vmem:[#allocation22_spill] sm:$0xff]  ;;  %v1338_v10 = vld [vmem:[#allocation23_spill] sm:$0xff] }
  0x92   :  { %399 = vmatpush.msra.mxu2 %v692_v9  ;;  %419 = vmatpush.msra.mxu3 %v696_v11  ;;  %v1337_v9 = vld [vmem:[#allocation19_spill] sm:$0xff]  ;;  %v1339_v11 = vld [vmem:[#allocation20_spill] sm:$0xff] }
  0x93   :  { %360 = vmatpush.msra.mxu0 %v702_v12  ;;  %380 = vmatpush.msra.mxu1 %v706_v14  ;;  %v1340_v12 = vld [vmem:[#allocation24_spill] sm:$0xff]  ;;  %v1342_v14 = vld [vmem:[#allocation25_spill] sm:$0xff] }
  0x94   :  { %400 = vmatpush.msra.mxu2 %v704_v13  ;;  %420 = vmatpush.msra.mxu3 %v708_v15  ;;  %v1341_v13 = vld [vmem:[#allocation21_spill] sm:$0xff]  ;;  %v1343_v15 = vld [vmem:[#allocation26_spill] sm:$0xff] }
  0x95   :  { %361 = vmatpush.msra.mxu0 %v714_v16  ;;  %381 = vmatpush.msra.mxu1 %v718_v18  ;;  %v1344_v16 = vld [vmem:[#allocation28_spill] sm:$0xff]  ;;  %v1346_v18 = vld [vmem:[#allocation29_spill] sm:$0xff] }
  0x96   :  { %401 = vmatpush.msra.mxu2 %v716_v17  ;;  %421 = vmatpush.msra.mxu3 %v720_v19  ;;  %v1345_v17 = vld [vmem:[#allocation27_spill] sm:$0xff]  ;;  %v1347_v19 = vld [vmem:[#allocation30_spill] sm:$0xff] }
  0x97   :  { %362 = vmatpush.msra.mxu0 %v726_v20  ;;  %382 = vmatpush.msra.mxu1 %v730_v22  ;;  %v1348_v20 = vld [vmem:[#allocation32_spill] sm:$0xff]  ;;  %v1350_v22 = vld [vmem:[#allocation33_spill] sm:$0xff] }
  0x98   :  { %402 = vmatpush.msra.mxu2 %v728_v21  ;;  %422 = vmatpush.msra.mxu3 %v732_v23  ;;  %v1349_v21 = vld [vmem:[#allocation31_spill] sm:$0xff]  ;;  %v1351_v23 = vld [vmem:[#allocation34_spill] sm:$0xff] }
  0x99   :  { %363 = vmatpush.msra.mxu0 %v738_v24  ;;  %383 = vmatpush.msra.mxu1 %v742_v26  ;;  %v1352_v24 = vld [vmem:[#allocation36_spill] sm:$0xff]  ;;  %v1354_v26 = vld [vmem:[#allocation37_spill] sm:$0xff] }
  0x9a   :  { %403 = vmatpush.msra.mxu2 %v740_v25  ;;  %423 = vmatpush.msra.mxu3 %v744_v27  ;;  %v1353_v25 = vld [vmem:[#allocation35_spill] sm:$0xff]  ;;  %v1355_v27 = vld [vmem:[#allocation38_spill] sm:$0xff] }
  0x9b   :  { %364 = vmatpush.msra.mxu0 %v750_v28  ;;  %384 = vmatpush.msra.mxu1 %v754_v30  ;;  %v1356_v28 = vld [vmem:[#allocation40_spill] sm:$0xff]  ;;  %v1358_v30 = vld [vmem:[#allocation41_spill] sm:$0xff] }
  0x9c   :  { %404 = vmatpush.msra.mxu2 %v752_v29  ;;  %424 = vmatpush.msra.mxu3 %v756_v31  ;;  %v1357_v29 = vld [vmem:[#allocation39_spill] sm:$0xff]  ;;  %v1359_v31 = vld [vmem:[#allocation42_spill] sm:$0xff] }
  0x9d   :  { %365 = vmatpush.msra.mxu0 %v762_v32  ;;  %385 = vmatpush.msra.mxu1 %v766_v34  ;;  %v1360_v32 = vld [vmem:[#allocation44_spill] sm:$0xff]  ;;  %v1362_v34 = vld [vmem:[#allocation45_spill] sm:$0xff] }
  0x9e   :  { %405 = vmatpush.msra.mxu2 %v764_v33  ;;  %425 = vmatpush.msra.mxu3 %v768_v35  ;;  %v1361_v33 = vld [vmem:[#allocation43_spill] sm:$0xff]  ;;  %v1363_v35 = vld [vmem:[#allocation46_spill] sm:$0xff] }
  0x9f   :  { %366 = vmatpush.msra.mxu0 %v774_v36  ;;  %386 = vmatpush.msra.mxu1 %v778_v38  ;;  %v1364_v36 = vld [vmem:[#allocation47_spill] sm:$0xff]  ;;  %v1366_v38 = vld [vmem:[#allocation50_spill] sm:$0xff] }
  0xa0   :  { %406 = vmatpush.msra.mxu2 %v776_v37  ;;  %426 = vmatpush.msra.mxu3 %v780_v39  ;;  %v1365_v37 = vld [vmem:[#allocation48_spill] sm:$0xff]  ;;  %v1367_v39 = vld [vmem:[#allocation49_spill] sm:$0xff] }
  0xa1   :  { %367 = vmatpush.msra.mxu0 %v786_v40  ;;  %387 = vmatpush.msra.mxu1 %v790_v42  ;;  %v1368_v40 = vld [vmem:[#allocation51_spill] sm:$0xff]  ;;  %v1370_v42 = vld [vmem:[#allocation54_spill] sm:$0xff] }
  0xa2   :  { %407 = vmatpush.msra.mxu2 %v788_v41  ;;  %427 = vmatpush.msra.mxu3 %v792_v43  ;;  %v1369_v41 = vld [vmem:[#allocation52_spill] sm:$0xff]  ;;  %v1371_v43 = vld [vmem:[#allocation53_spill] sm:$0xff] }
  0xa3   :  { %368 = vmatpush.msra.mxu0 %v798_v44  ;;  %388 = vmatpush.msra.mxu1 %v802_v46  ;;  %v1372_v44 = vld [vmem:[#allocation55_spill] sm:$0xff]  ;;  %v1374_v46 = vld [vmem:[#allocation58_spill] sm:$0xff] }
  0xa4   :  { %408 = vmatpush.msra.mxu2 %v800_v45  ;;  %428 = vmatpush.msra.mxu3 %v804_v47  ;;  %v1373_v45 = vld [vmem:[#allocation56_spill] sm:$0xff]  ;;  %v1375_v47 = vld [vmem:[#allocation57_spill] sm:$0xff] }
  0xa5   :  { %369 = vmatpush.msra.mxu0 %v810_v48  ;;  %389 = vmatpush.msra.mxu1 %v814_v50  ;;  %v1376_v48 = vld [vmem:[#allocation59_spill] sm:$0xff]  ;;  %v1378_v50 = vld [vmem:[#allocation62_spill] sm:$0xff] }
  0xa6   :  { %409 = vmatpush.msra.mxu2 %v812_v49  ;;  %429 = vmatpush.msra.mxu3 %v816_v51  ;;  %v1377_v49 = vld [vmem:[#allocation60_spill] sm:$0xff]  ;;  %v1379_v51 = vld [vmem:[#allocation61_spill] sm:$0xff] }
  0xa7   :  { %370 = vmatpush.msra.mxu0 %v822_v52  ;;  %390 = vmatpush.msra.mxu1 %v1328_v0  ;;  %v1380_v52 = vld [vmem:[#allocation63_spill] sm:$0xff]  ;;  %v1387_v0 = vld [vmem:[#allocation69_spill] sm:$0xff] }
  0xa8   :  { %410 = vmatpush.msra.mxu2 %v1329_v1  ;;  %430 = vmatpush.msra.mxu3 %v1330_v2  ;;  %v1388_v1 = vld [vmem:[#allocation71_spill] sm:$0xff]  ;;  %v1389_v2 = vld [vmem:[#allocation72_spill] sm:$0xff] }
  0xa9   :  { %371 = vmatpush.msra.mxu0 %v1331_v3  ;;  %391 = vmatpush.msra.mxu1 %v1332_v4  ;;  %v1390_v3 = vld [vmem:[#allocation74_spill] sm:$0xff]  ;;  %v1391_v4 = vld [vmem:[#allocation73_spill] sm:$0xff] }
  0xaa   :  { %411 = vmatpush.msra.mxu2 %v1333_v5  ;;  %431 = vmatpush.msra.mxu3 %v1334_v6  ;;  %v1392_v5 = vld [vmem:[#allocation75_spill] sm:$0xff]  ;;  %v1393_v6 = vld [vmem:[#allocation76_spill] sm:$0xff] }
  0xab   :  { %372 = vmatpush.msra.mxu0 %v1335_v7  ;;  %392 = vmatpush.msra.mxu1 %v1336_v8  ;;  %v1394_v7 = vld [vmem:[#allocation77_spill] sm:$0xff]  ;;  %v1395_v8 = vld [vmem:[#allocation78_spill] sm:$0xff] }
  0xac   :  { %412 = vmatpush.msra.mxu2 %v1337_v9  ;;  %432 = vmatpush.msra.mxu3 %v1338_v10 }
  0xad   :  { %437 = vmatpush.msrb.mxu0 %v1339_v11  ;;  %457 = vmatpush.msrb.mxu1 %v1340_v12 }
  0xae   :  { %477 = vmatpush.msrb.mxu2 %v1341_v13  ;;  %497 = vmatpush.msrb.mxu3 %v1342_v14 }
  0xaf   :  { %438 = vmatpush.msrb.mxu0 %v1343_v15  ;;  %458 = vmatpush.msrb.mxu1 %v1344_v16 }
  0xb0   :  { %478 = vmatpush.msrb.mxu2 %v1345_v17  ;;  %498 = vmatpush.msrb.mxu3 %v1346_v18 }
  0xb1   :  { %439 = vmatpush.msrb.mxu0 %v1347_v19  ;;  %459 = vmatpush.msrb.mxu1 %v1348_v20 }
  0xb2   :  { %479 = vmatpush.msrb.mxu2 %v1349_v21  ;;  %499 = vmatpush.msrb.mxu3 %v1350_v22 }
  0xb3   :  { %440 = vmatpush.msrb.mxu0 %v1351_v23  ;;  %460 = vmatpush.msrb.mxu1 %v1352_v24  ;;  %v549_v23 = vld [vmem:[%s1190_s3] ss:$0 sm:$0xff] }
  0xb4   :  { %480 = vmatpush.msrb.mxu2 %v1353_v25  ;;  %500 = vmatpush.msrb.mxu3 %v1354_v26 }
  0xb5   :  { %441 = vmatpush.msrb.mxu0 %v1355_v27  ;;  %461 = vmatpush.msrb.mxu1 %v1356_v28 }
  0xb6   :  { %481 = vmatpush.msrb.mxu2 %v1357_v29  ;;  %501 = vmatpush.msrb.mxu3 %v1358_v30 }
  0xb7   :  { %442 = vmatpush.msrb.mxu0 %v1359_v31  ;;  %462 = vmatpush.msrb.mxu1 %v1360_v32 }
  0xb8   :  { %482 = vmatpush.msrb.mxu2 %v1361_v33  ;;  %502 = vmatpush.msrb.mxu3 %v1362_v34 }
  0xb9   :  { %443 = vmatpush.msrb.mxu0 %v928_v60  ;;  %463 = vmatpush.msrb.mxu1 %v934_v55  ;;  %v1381_v55 = vld [vmem:[#allocation64_spill] sm:$0xff]  ;;  %v1384_v60 = vld [vmem:[#allocation67_spill] sm:$0xff] }
  0xba   :  { %483 = vmatpush.msrb.mxu2 %v1363_v35  ;;  %503 = vmatpush.msrb.mxu3 %v1364_v36 }
  0xbb   :  { %444 = vmatpush.msrb.mxu0 %v1365_v37  ;;  %464 = vmatpush.msrb.mxu1 %v1366_v38 }
  0xbc   :  { %484 = vmatpush.msrb.mxu2 %v1367_v39  ;;  %504 = vmatpush.msrb.mxu3 %v1368_v40 }
  0xbd   :  { %445 = vmatpush.msrb.mxu0 %v1369_v41  ;;  %465 = vmatpush.msrb.mxu1 %v1370_v42 }
  0xbe   :  { %485 = vmatpush.msrb.mxu2 %v1371_v43  ;;  %505 = vmatpush.msrb.mxu3 %v1372_v44 }
  0xbf   :  { %446 = vmatpush.msrb.mxu0 %v1373_v45  ;;  %466 = vmatpush.msrb.mxu1 %v1374_v46 }
  0xc0   :  { %486 = vmatpush.msrb.mxu2 %v1375_v47  ;;  %506 = vmatpush.msrb.mxu3 %v1376_v48 }
  0xc1   :  { %447 = vmatpush.msrb.mxu0 %v1377_v49  ;;  %467 = vmatpush.msrb.mxu1 %v1378_v50 }
  0xc2   :  { %487 = vmatpush.msrb.mxu2 %v1379_v51  ;;  %507 = vmatpush.msrb.mxu3 %v1380_v52 }
  0xc3   :  { %448 = vmatpush.msrb.mxu0 %v1381_v55  ;;  %468 = vmatpush.msrb.mxu1 %v1382_v56 }
  0xc4   :  { %488 = vmatpush.msrb.mxu2 %v1383_v57  ;;  %508 = vmatpush.msrb.mxu3 %v1384_v60 }
  0xc5   :  { %449 = vmatpush.msrb.mxu0 %v1385_v61  ;;  %469 = vmatpush.msrb.mxu1 %v1386_v53 }
  0xc6   :  { %489 = vmatpush.msrb.mxu2 %v1387_v0  ;;  %509 = vmatpush.msrb.mxu3 %v1388_v1 }
  0xc7   :  { %450 = vmatpush.msrb.mxu0 %v1389_v2  ;;  %470 = vmatpush.msrb.mxu1 %v1390_v3 }
  0xc8   :  { %490 = vmatpush.msrb.mxu2 %v1391_v4  ;;  %510 = vmatpush.msrb.mxu3 %v1392_v5 }
  0xc9   :  { %451 = vmatpush.msrb.mxu0 %v1393_v6  ;;  %471 = vmatpush.msrb.mxu1 %v1030_v59 }
  0xca   :  { %491 = vmatpush.msrb.mxu2 %v1394_v7  ;;  %511 = vmatpush.msrb.mxu3 %v1395_v8 }
  0xcb   :  { %452 = vmatpush.msrb.mxu0 %v1036_v62  ;;  %472 = vmatpush.msrb.mxu1 %v1042_v63  ;;  %v548_v63 = vld [vmem:[%s1189_s2] ss:$0 sm:$0xff]  ;;  %s634_s2 = smov [#allocation7]  }
  0xcc   :  { %492 = vmatpush.msrb.mxu2 %v1038_v58  ;;  %512 = vmatpush.msrb.mxu3 %v1044_v54  ;;  %s530_s3 = sshll.u32 %s634_s2, 4  ;;  %s531_s3 = int_to_ptr.vmem [resolvable:$true] %s530_s3 }
  0xdb   :  { %v201_v10 = vpop.f32.mrf.mxu0 }
  0xdd   :  { %v241_v12 = vpop.f32.mrf.mxu2 }
  0xdf   :  { %v221_v9 = vpop.f32.mrf.mxu1 }
  0xe0   :  { %v222_v11 = vadd.f32 %v221_v9, %v201_v10 }
  0xe1   :  { %v261_v14 = vpop.f32.mrf.mxu3 }
  0xe2   :  { %v242_v13 = vadd.f32 %v241_v12, %v222_v11 }
  0xe4   :  { %v262_v15 = vadd.f32 %v261_v14, %v242_v13 }
 0x108   :  { %v281_v59 = vpop.f32.mrf.mxu0 }
 0x109   :  { %v282_v16 = vadd.f32 %v281_v59, %v262_v15 }
 0x10b   :  { %v301_v17 = vpop.f32.mrf.mxu1 }
 0x10c   :  { %v302_v18 = vadd.f32 %v301_v17, %v282_v16 }
 0x10e   :  { %v321_v19 = vpop.f32.mrf.mxu2 }
 0x10f   :  { %v322_v20 = vadd.f32 %v321_v19, %v302_v18 }
 0x111   :  { %v341_v62 = vpop.f32.mrf.mxu3 }
 0x112   :  { %v342_v58 = vadd.f32 %v341_v62, %v322_v20 }
 0x114   :  { %v348_v54 = vadd.f32 %v548_v63, %v342_v58 }
 0x116   :  { %550 = vtanh.f32 %v348_v54 }
 0x11c   :  { %v551_v21 = vpop.eup %550 }
 0x11d   :  { %v350_v22 = vmul.f32 %v551_v21, %v551_v21 }
 0x11f   :  { %v351_v24 = vsub.f32 1.0, %v350_v22 }
 0x121   :  { %v356_v25 = vmul.f32 %v549_v23, %v351_v24 }
 0x123   :  { %373 = vmatmul.f32.vlgmr.msra.gmra.mxu0 %v356_v25  ;;  %393 = vmatmul.f32.vlgmr.msra.gmra.mxu1 %v356_v25 }
 0x124   :  { %413 = vmatmul.f32.vlgmr.msra.gmra.mxu2 %v356_v25  ;;  %433 = vmatmul.f32.vlgmr.msra.gmra.mxu3 %v356_v25 }
 0x12b   :  { %453 = vmatmul.f32.vlgmr.msrb.gmra.mxu0 %v356_v25  ;;  %473 = vmatmul.f32.vlgmr.msrb.gmra.mxu1 %v356_v25 }
 0x12c   :  { %493 = vmatmul.f32.vlgmr.msrb.gmra.mxu2 %v356_v25  ;;  %513 = vmatmul.f32.vlgmr.msrb.gmra.mxu3 %v356_v25 }
 0x1a0   :  { %v374_v26 = vpop.f32.mrf.mxu0  ;;  %v394_v27 = vpop.f32.mrf.mxu1 }
 0x1a1   :  { %517 = vst [vmem:[#allocation7] sm:$0xff] %v374_v26 }
 0x1a2   :  { %518 = vst [vmem:[#allocation7 + $0x8] sm:$0xff] %v394_v27 }
 0x1a7   :  { %v414_v28 = vpop.f32.mrf.mxu2  ;;  %v434_v29 = vpop.f32.mrf.mxu3 }
 0x1a8   :  { %519 = vst [vmem:[#allocation7 + $0x10] sm:$0xff] %v414_v28  ;;  %v454_v30 = vpop.f32.mrf.mxu0  ;;  %v474_v31 = vpop.f32.mrf.mxu1 }
 0x1a9   :  { %520 = vst [vmem:[#allocation7 + $0x18] sm:$0xff] %v434_v29 }
 0x1aa   :  { %521 = vst [vmem:[#allocation7 + $0x20] sm:$0xff] %v454_v30 }
 0x1ab   :  { %522 = vst [vmem:[#allocation7 + $0x28] sm:$0xff] %v474_v31 }
 0x1af   :  { %v494_v32 = vpop.f32.mrf.mxu2  ;;  %v514_v33 = vpop.f32.mrf.mxu3 }
 0x1b0   :  { %523 = vst [vmem:[#allocation7 + $0x30] sm:$0xff] %v494_v32 }
 0x1b1   :  { %524 = vst [vmem:[#allocation7 + $0x38] sm:$0xff] %v514_v33 }
 0x1b2   :  { %535 = dma.vmem_to_hbm [thread:$0]  %s531_s3, 1024, %s533_s5, [#allocation4]  }
 0x1b3   :  { %628 = dma.done.wait [#allocation4], 1024  }
 0x1b4   :  { %629 = vsyncadd [#allocation4], 4294966272 }
 0x1b5   :  { %540 = vsyncpa [#allocation3], 1 }
 0x1b6   :  { %541 = vsyncpa [#allocation6], 1 }
 0x1b7   :  { %542 = vsyncpa [#allocation4], 1 }

</bundles_post_ra>
